<compile_context>
chip_gen: v6e
topology: v6e:2x2x1
jax: 0.10.0
libtpu: 0.0.40
codegen_flags: <defaults>
</compile_context>

<pallas_src>
import math
import functools

import jax
import jax.numpy as jnp
from jax.experimental import pallas as pl
from jax.experimental.pallas import tpu as pltpu


# ---------------------------------------------------------------------------
# Shared math
# ---------------------------------------------------------------------------

def _layer_norm(x, gamma, beta, eps=1e-5):
    mean = jnp.mean(x, axis=-1, keepdims=True)
    var = jnp.mean((x - mean) ** 2, axis=-1, keepdims=True)
    return (x - mean) * jax.lax.rsqrt(var + eps) * gamma + beta


# Row indices inside the packed per-layer vector array (L, N_VEC, Fmax)
_BQ, _BK, _BV, _BO, _G1, _BE1, _B1, _B2, _G2, _BE2 = range(10)
N_VEC = 10


# ---------------------------------------------------------------------------
# Kernel 1: all transformer blocks fused into a single pallas_call.
#   grid = (B // B_TILE, L); batch axis "parallel", layer axis "arbitrary".
#   Residual stream (B_TILE*S, D) f32 is resident in VMEM scratch across
#   layers; next layer's weights are prefetched by the BlockSpec pipeline.
# ---------------------------------------------------------------------------

def fused_blocks_kernel(x_ref,
                        wq_ref, wk_ref, wv_ref, wo_ref,
                        w1_ref, w2_ref,
                        vec_ref,
                        o_ref, x_sc,
                        *, num_heads, b_tile, d_model, d_ff):
    l = pl.program_id(1)
    num_layers = pl.num_programs(1)

    S = x_ref.shape[1]
    D = d_model
    M = b_tile * S
    hd = D // num_heads

    # Load the embedded + pos-encoded activations into the resident scratch
    # once per batch tile (layer 0); later layers read/write the scratch only.
    @pl.when(l == 0)
    def _():
        x_sc[...] = x_ref[...].reshape(M, D).astype(jnp.float32)

    x = x_sc[...]                                   # (M, D) f32 residual stream

    # Packed per-layer vectors: one DMA, sliced here (all 2-D (1, width)).
    vec = vec_ref[0]                                # (N_VEC, Fmax) f32

    def vrow(i, width):
        return vec[i:i + 1, :width]

    bq, bk, bv, bo = (vrow(_BQ, D), vrow(_BK, D), vrow(_BV, D), vrow(_BO, D))
    g1, be1 = vrow(_G1, D), vrow(_BE1, D)
    b1 = vrow(_B1, d_ff)
    b2, g2, be2 = vrow(_B2, D), vrow(_G2, D), vrow(_BE2, D)

    # ---- QKV projections on the folded (M, D) block (bf16 MXU, f32 acc) ----
    xb = x.astype(jnp.bfloat16)
    q = jnp.dot(xb, wq_ref[0], preferred_element_type=jnp.float32) + bq
    k = jnp.dot(xb, wk_ref[0], preferred_element_type=jnp.float32) + bk
    v = jnp.dot(xb, wv_ref[0], preferred_element_type=jnp.float32) + bv

    # Fold the attention scale once into q (one (M, D) multiply).
    q = q * (1.0 / math.sqrt(hd))

    # Cast once; slice the bf16 copies inside the head loop.
    qb = q.astype(jnp.bfloat16)
    kb = k.astype(jnp.bfloat16)
    vb = v.astype(jnp.bfloat16)
    wo = wo_ref[0]                                  # (D, D) bf16

    # ---- Multi-head attention, PV fused with W_O (no attention scratch) ----
    attn_rows = []
    for b in range(b_tile):
        r0 = b * S
        acc_b = jnp.zeros((S, D), jnp.float32)
        for h in range(num_heads):
            c0 = h * hd
            qh = qb[r0:r0 + S, c0:c0 + hd]
            kh = kb[r0:r0 + S, c0:c0 + hd]
            vh = vb[r0:r0 + S, c0:c0 + hd]
            s = jnp.einsum('qd,kd->qk', qh, kh,
                           preferred_element_type=jnp.float32)       # (S, S)
            s = s - jnp.max(s, axis=-1, keepdims=True)
            p = jnp.exp(s)
            inv = pl.reciprocal(jnp.sum(p, axis=-1, keepdims=True))  # exact
            oh = jnp.dot(p.astype(jnp.bfloat16), vh,
                         preferred_element_type=jnp.float32) * inv   # (S, hd)
            acc_b = acc_b + jnp.dot(oh.astype(jnp.bfloat16),
                                    wo[c0:c0 + hd, :],
                                    preferred_element_type=jnp.float32)
        attn_rows.append(acc_b)
    attn = attn_rows[0] if b_tile == 1 else jnp.concatenate(attn_rows, axis=0)
    attn = attn + bo

    x1 = _layer_norm(x + attn, g1, be1)

    # ---- Feed-forward (ReLU) ----
    h1 = jnp.dot(x1.astype(jnp.bfloat16), w1_ref[0],
                 preferred_element_type=jnp.float32) + b1
    h1 = jnp.maximum(h1, 0.0)
    h2 = jnp.dot(h1.astype(jnp.bfloat16), w2_ref[0],
                 preferred_element_type=jnp.float32) + b2
    x2 = _layer_norm(x1 + h2, g2, be2)

    x_sc[...] = x2                                  # carry to next layer

    @pl.when(l == num_layers - 1)
    def _():
        o_ref[...] = x2.reshape(b_tile, S, D).astype(o_ref.dtype)


def run_blocks(x, sp, num_heads, b_tile):
    """x: (B, S, D) f32. sp: stacked block params (bf16 weights, packed f32 vecs)."""
    B, S, D = x.shape
    L = sp['wq'].shape[0]
    F = sp['w1'].shape[2]
    Fmax = sp['vec'].shape[2]
    assert D % num_heads == 0, "d_model must be divisible by num_heads"
    assert B % b_tile == 0
    nb = B // b_tile
    M = b_tile * S

    def wmap(shape):   # weights / packed vectors: depend only on the layer index
        return pl.BlockSpec(shape, lambda b, l: (l, 0, 0))

    in_specs = [
        pl.BlockSpec((b_tile, S, D), lambda b, l: (b, 0, 0)),
        wmap((1, D, D)), wmap((1, D, D)), wmap((1, D, D)), wmap((1, D, D)),
        wmap((1, D, F)), wmap((1, F, D)),
        wmap((1, N_VEC, Fmax)),
    ]

    flops = int(B * L * (8 * S * D * D + 4 * S * S * D + 4 * S * D * F))
    trans = int(B * L * num_heads * S * S)
    weight_bytes = L * nb * ((4 * D * D + 2 * D * F) * 2 + N_VEC * Fmax * 4)
    act_bytes = 2 * B * S * D * 4
    nbytes = int(weight_bytes + act_bytes)

    # VMEM budget: double-buffered layer weights + packed vectors + x/o blocks
    # + resident residual scratch, with margin.
    wstep = (4 * D * D + 2 * D * F) * 2 + N_VEC * Fmax * 4
    vmem_needed = 2 * wstep + 4 * (M * D * 4) + M * D * 4
    vmem_limit = int(min(max(vmem_needed * 2 + (4 << 20), 32 << 20), 64 << 20))

    return pl.pallas_call(
        functools.partial(fused_blocks_kernel, num_heads=num_heads,
                          b_tile=b_tile, d_model=D, d_ff=F),
        out_shape=jax.ShapeDtypeStruct((B, S, D), jnp.float32),
        grid=(nb, L),
        in_specs=in_specs,
        out_specs=pl.BlockSpec((b_tile, S, D), lambda b, l: (b, 0, 0)),
        scratch_shapes=[pltpu.VMEM((M, D), jnp.float32)],   # residual stream
        compiler_params=pltpu.CompilerParams(
            dimension_semantics=("parallel", "arbitrary"),
            vmem_limit_bytes=vmem_limit),
        cost_estimate=pl.CostEstimate(flops=flops, transcendentals=trans,
                                      bytes_accessed=nbytes),
    )(x, sp['wq'], sp['wk'], sp['wv'], sp['wo'], sp['w1'], sp['w2'], sp['vec'])


# ---------------------------------------------------------------------------
# Kernel 2: vocab-tiled LM head + cross-entropy with online logsumexp.
#   grid = (M // M_TILE, V // V_TILE); rows "parallel", vocab "arbitrary".
#   Logits emitted as bf16; per-row NLL emitted, mean taken outside.
# ---------------------------------------------------------------------------

def lm_head_kernel(x_ref, w_ref, b_ref, tok_ref, logits_ref, nll_ref,
                   m_sc, l_sc, t_sc, *, v_tile):
    v = pl.program_id(1)
    nv = pl.num_programs(1)

    @pl.when(v == 0)
    def _():
        m_sc[...] = jnp.full_like(m_sc, -jnp.inf)
        l_sc[...] = jnp.zeros_like(l_sc)
        t_sc[...] = jnp.zeros_like(t_sc)

    logits = jnp.dot(x_ref[...].astype(jnp.bfloat16), w_ref[...],
                     preferred_element_type=jnp.float32) + b_ref[...]  # (Mt, Vt)
    logits_ref[...] = logits.astype(logits_ref.dtype)                  # bf16 out

    # online logsumexp across vocab tiles (f32)
    m_new = jnp.maximum(m_sc[...], jnp.max(logits, axis=-1, keepdims=True))
    alpha = jnp.exp(m_sc[...] - m_new)
    l_sc[...] = alpha * l_sc[...] + jnp.sum(jnp.exp(logits - m_new),
                                            axis=-1, keepdims=True)
    m_sc[...] = m_new

    # target-logit accumulation without materializing a (M, V) one-hot
    mt = logits.shape[0]
    col = jax.lax.broadcasted_iota(jnp.int32, (mt, v_tile), 1) + v * v_tile
    hit = jnp.where(col == tok_ref[...], logits, 0.0)
    t_sc[...] = t_sc[...] + jnp.sum(hit, axis=-1, keepdims=True)

    @pl.when(v == nv - 1)
    def _():
        lse = m_sc[...] + jnp.log(l_sc[...])              # (Mt, 1)
        nll_ref[...] = lse - t_sc[...]                    # per-row NLL


def run_lm_head(x2d, w, b, tok2d, *, v_tile=None, m_tile=None):
    M, D = x2d.shape
    V = w.shape[1]
    if v_tile is None:
        v_tile = min(V, 512)
    assert V % v_tile == 0
    if m_tile is None:
        m_tile = M
    assert M % m_tile == 0
    nv = V // v_tile
    nm = M // m_tile

    flops = int(2 * M * D * V)
    trans = int(M * V)
    nbytes = int(M * D * 4 + D * V * 2 + V * 4 + M * V * 2 + M * 8)

    vmem_needed = 2 * (m_tile * D * 4 + D * v_tile * 2 + v_tile * 4
                       + m_tile * v_tile * 2 + 2 * m_tile * 4) + 3 * m_tile * 4
    vmem_limit = int(min(max(vmem_needed * 2 + (4 << 20), 32 << 20), 64 << 20))

    logits, nll = pl.pallas_call(
        functools.partial(lm_head_kernel, v_tile=v_tile),
        out_shape=(jax.ShapeDtypeStruct((M, V), jnp.bfloat16),
                   jax.ShapeDtypeStruct((M, 1), jnp.float32)),
        grid=(nm, nv),
        in_specs=[
            pl.BlockSpec((m_tile, D), lambda m, v: (m, 0)),      # rows tile of x
            pl.BlockSpec((D, v_tile), lambda m, v: (0, v)),      # vocab tile of W
            pl.BlockSpec((1, v_tile), lambda m, v: (0, v)),      # vocab tile of b
            pl.BlockSpec((m_tile, 1), lambda m, v: (m, 0)),      # targets
        ],
        out_specs=(pl.BlockSpec((m_tile, v_tile), lambda m, v: (m, v)),
                   pl.BlockSpec((m_tile, 1), lambda m, v: (m, 0))),
        scratch_shapes=[pltpu.VMEM((m_tile, 1), jnp.float32),    # running max
                        pltpu.VMEM((m_tile, 1), jnp.float32),    # running sum-exp
                        pltpu.VMEM((m_tile, 1), jnp.float32)],   # target logits
        compiler_params=pltpu.CompilerParams(
            dimension_semantics=("parallel", "arbitrary"),
            vmem_limit_bytes=vmem_limit),
        cost_estimate=pl.CostEstimate(flops=flops, transcendentals=trans,
                                      bytes_accessed=nbytes),
    )(x2d, w, b, tok2d)

    loss = jnp.mean(nll)            # tiny (M,1) reduction outside the kernel
    return logits, loss


# ---------------------------------------------------------------------------
# Full forward
# ---------------------------------------------------------------------------

def dist_transformer_forward(tokens, params, num_heads, b_tile=None, v_tile=None):
    B, S = tokens.shape
    x = params['embed'][tokens]                          # embedding gather (glue)
    x = x + params['pos_enc'][:S][None]                  # positional enc (glue)
    if b_tile is None:
        b_tile = B
    x = run_blocks(x, params['stacked'], num_heads, b_tile)   # fused Pallas blocks
    D = x.shape[-1]
    x2d = x.reshape(B * S, D)                            # lane/sublane-dense M
    tok2d = tokens.reshape(B * S, 1).astype(jnp.int32)
    logits2d, loss = run_lm_head(x2d, params['lm_w_bf16'], params['lm_b'],
                                 tok2d, v_tile=v_tile)
    return logits2d.reshape(B, S, -1), loss


# ---------------------------------------------------------------------------
# Deterministic parameter init + pure-JAX f32 reference
# ---------------------------------------------------------------------------

def stack_block_params(blocks, d_model, d_ff):
    fmax = max(d_model, d_ff)

    def stack_w(name):
        return jnp.stack([bp[name] for bp in blocks]).astype(jnp.bfloat16)

    order = [('bq', d_model), ('bk', d_model), ('bv', d_model), ('bo', d_model),
             ('g1', d_model), ('be1', d_model), ('b1', d_ff), ('b2', d_model),
             ('g2', d_model), ('be2', d_model)]

    def padded(name, width):
        return jnp.stack([jnp.pad(bp[name].reshape(-1), (0, fmax - width))
                          for bp in blocks])              # (L, fmax)

    vec = jnp.stack([padded(n, w) for n, w in order], axis=1)  # (L, N_VEC, fmax)

    return {'wq': stack_w('wq'), 'wk': stack_w('wk'), 'wv': stack_w('wv'),
            'wo': stack_w('wo'), 'w1': stack_w('w1'), 'w2': stack_w('w2'),
            'vec': vec.astype(jnp.float32)}


def make_params(key, vocab_size, d_model, d_ff, max_len, num_blocks):
    ks = jax.random.split(key, 2 + 6 * num_blocks)
    ki = iter(ks)

    def dense(k, fan_in, shape):
        return jax.random.normal(k, shape, jnp.float32) / math.sqrt(fan_in)

    params = {
        'embed': jax.random.normal(next(ki), (vocab_size, d_model), jnp.float32) * 0.02,
        'lm_w': dense(next(ki), d_model, (d_model, vocab_size)),
        'lm_b': jnp.zeros((1, vocab_size), jnp.float32),
        'blocks': [],
    }

    # sinusoidal positional encoding
    pos = jnp.arange(max_len, dtype=jnp.float32)[:, None]
    i = jnp.arange(0, d_model, 2, dtype=jnp.float32)[None, :]
    angle = pos / jnp.power(10000.0, i / d_model)
    pe = jnp.zeros((max_len, d_model), jnp.float32)
    pe = pe.at[:, 0::2].set(jnp.sin(angle)).at[:, 1::2].set(jnp.cos(angle))
    params['pos_enc'] = pe

    for _ in range(num_blocks):
        bp = {
            'wq': dense(next(ki), d_model, (d_model, d_model)),
            'wk': dense(next(ki), d_model, (d_model, d_model)),
            'wv': dense(next(ki), d_model, (d_model, d_model)),
            'wo': dense(next(ki), d_model, (d_model, d_model)),
            'bq': jnp.zeros((1, d_model), jnp.float32),
            'bk': jnp.zeros((1, d_model), jnp.float32),
            'bv': jnp.zeros((1, d_model), jnp.float32),
            'bo': jnp.zeros((1, d_model), jnp.float32),
            'g1': jnp.ones((1, d_model), jnp.float32),
            'be1': jnp.zeros((1, d_model), jnp.float32),
            'w1': dense(next(ki), d_model, (d_model, d_ff)),
            'b1': jnp.zeros((1, d_ff), jnp.float32),
            'w2': dense(next(ki), d_ff, (d_ff, d_model)),
            'b2': jnp.zeros((1, d_model), jnp.float32),
            'g2': jnp.ones((1, d_model), jnp.float32),
            'be2': jnp.zeros((1, d_model), jnp.float32),
        }
        params['blocks'].append(bp)

    # Pallas-side copies: stacked per-layer arrays (bf16 matmul weights,
    # packed f32 vectors), LM head weight in bf16.
    params['stacked'] = stack_block_params(params['blocks'], d_model, d_ff)
    params['lm_w_bf16'] = params['lm_w'].astype(jnp.bfloat16)
    return params


def ref_block(x, p, num_heads):
    B, S, D = x.shape
    hd = D // num_heads
    q = x @ p['wq'] + p['bq'][0]
    k = x @ p['wk'] + p['bk'][0]
    v = x @ p['wv'] + p['bv'][0]
    q = q.reshape(B, S, num_heads, hd).transpose(0, 2, 1, 3)
    k = k.reshape(B, S, num_heads, hd).transpose(0, 2, 1, 3)
    v = v.reshape(B, S, num_heads, hd).transpose(0, 2, 1, 3)
    scores = jnp.einsum('bhqd,bhkd->bhqk', q, k) / math.sqrt(hd)
    p_attn = jax.nn.softmax(scores, axis=-1)
    attn = jnp.einsum('bhqk,bhkd->bhqd', p_attn, v)
    attn = attn.transpose(0, 2, 1, 3).reshape(B, S, D)
    attn = attn @ p['wo'] + p['bo'][0]
    x1 = _layer_norm(x + attn, p['g1'][0], p['be1'][0])
    h = jnp.maximum(x1 @ p['w1'] + p['b1'][0], 0.0)
    h = h @ p['w2'] + p['b2'][0]
    return _layer_norm(x1 + h, p['g2'][0], p['be2'][0])


def ref_forward(tokens, params, num_heads):
    x = params['embed'][tokens]
    x = x + params['pos_enc'][:tokens.shape[1]][None]
    for bp in params['blocks']:
        x = ref_block(x, bp, num_heads)
    logits = x @ params['lm_w'] + params['lm_b'][0]
    logp = jax.nn.log_softmax(logits, axis=-1)
    tgt = jnp.take_along_axis(logp, tokens[..., None], axis=-1)[..., 0]
    return logits, -jnp.mean(tgt)


# ---------------------------------------------------------------------------
# Main
# ---------------------------------------------------------------------------

if __name__ == "__main__":
    vocab_size, d_model, num_heads, d_ff, max_len, num_blocks = 256, 32, 4, 64, 16, 2
    B, S = 2, 8

    key = jax.random.PRNGKey(0)
    kp, kt = jax.random.split(key)
    params = make_params(kp, vocab_size, d_model, d_ff, max_len, num_blocks)
    tokens = jax.random.randint(kt, (B, S), 0, vocab_size, dtype=jnp.int32)

    # b_tile = B folds the whole (tiny) batch into one block -> one weight
    # fetch per layer and M = B*S matmul rows; v_tile = vocab (lane-aligned).
    logits, loss = dist_transformer_forward(tokens, params, num_heads,
                                            b_tile=B, v_tile=vocab_size)
    jax.block_until_ready((logits, loss))

    # sanity check against the pure-JAX f32 reference (kernel runs bf16 matmuls)
    ref_logits, ref_loss = ref_forward(tokens, params, num_heads)
    assert logits.shape == (B, S, vocab_size)
    rel_err = float(jnp.linalg.norm(logits.astype(jnp.float32) - ref_logits) /
                    (jnp.linalg.norm(ref_logits) + 1e-12))
    assert rel_err < 0.05, f"logits relative error too large: {rel_err}"
    assert abs(float(loss) - float(ref_loss)) < 0.1, \
        f"loss mismatch: {float(loss)} vs {float(ref_loss)}"

    print("KERNEL_OK")
</pallas_src>

<mosaic_0001>
module attributes {stable_mosaic.version = 11 : i64} {
  func.func @fused_blocks_kernel(%arg0: i32, %arg1: i32, %arg2: memref<2x8x32xf32, #tpu.memory_space<vmem>>, %arg3: memref<1x32x32xbf16, #tpu.memory_space<vmem>>, %arg4: memref<1x32x32xbf16, #tpu.memory_space<vmem>>, %arg5: memref<1x32x32xbf16, #tpu.memory_space<vmem>>, %arg6: memref<1x32x32xbf16, #tpu.memory_space<vmem>>, %arg7: memref<1x32x64xbf16, #tpu.memory_space<vmem>>, %arg8: memref<1x64x32xbf16, #tpu.memory_space<vmem>>, %arg9: memref<1x10x64xf32, #tpu.memory_space<vmem>>, %arg10: memref<2x8x32xf32, #tpu.memory_space<vmem>>, %arg11: memref<16x32xf32, #tpu.memory_space<vmem>>) attributes {dimension_semantics = [#tpu.dimension_semantics<parallel>, #tpu.dimension_semantics<arbitrary>], iteration_bounds = array<i64: 1, 2>, scalar_prefetch = 0 : i64, scratch_operands = 1 : i64, tpu.core_type = #tpu.core_type<tc>, window_params = [{transform_indices = @transform_0, window_bounds = array<i64: 2, 8, 32>}, {transform_indices = @transform_1, window_bounds = array<i64: 1, 32, 32>}, {transform_indices = @transform_2, window_bounds = array<i64: 1, 32, 32>}, {transform_indices = @transform_3, window_bounds = array<i64: 1, 32, 32>}, {transform_indices = @transform_4, window_bounds = array<i64: 1, 32, 32>}, {transform_indices = @transform_5, window_bounds = array<i64: 1, 32, 64>}, {transform_indices = @transform_6, window_bounds = array<i64: 1, 64, 32>}, {transform_indices = @transform_7, window_bounds = array<i64: 1, 10, 64>}, {transform_indices = @transform_8, window_bounds = array<i64: 2, 8, 32>}]} {
    %c0_i32 = arith.constant 0 : i32
    %0 = arith.cmpi eq, %arg1, %c0_i32 : i32
    %1 = arith.extui %0 : i1 to i32
    %c0_i32_0 = arith.constant 0 : i32
    %2 = arith.cmpi ne, %1, %c0_i32_0 : i32
    scf.if %2 {
      %c0_84 = arith.constant 0 : index
      %c0_85 = arith.constant 0 : index
      %c0_86 = arith.constant 0 : index
      %268 = vector.load %arg2[%c0_84, %c0_85, %c0_86] : memref<2x8x32xf32, #tpu.memory_space<vmem>>, vector<2x8x32xf32>
      %269 = vector.shape_cast %268 : vector<2x8x32xf32> to vector<16x32xf32>
      %c0_87 = arith.constant 0 : index
      %c0_88 = arith.constant 0 : index
      %270 = vector.load %arg11[%c0_87, %c0_88] : memref<16x32xf32, #tpu.memory_space<vmem>>, vector<16x32xf32>
      tpu.vector_store %arg11[%c0_87, %c0_88], %269 {strides = array<i32>} : memref<16x32xf32, #tpu.memory_space<vmem>>, vector<16x32xf32>,
    } else {
    }
    %c0 = arith.constant 0 : index
    %c0_1 = arith.constant 0 : index
    %3 = vector.load %arg11[%c0, %c0_1] : memref<16x32xf32, #tpu.memory_space<vmem>>, vector<16x32xf32>
    %c0_2 = arith.constant 0 : index
    %c0_3 = arith.constant 0 : index
    %c0_4 = arith.constant 0 : index
    %4 = vector.load %arg9[%c0_2, %c0_3, %c0_4] : memref<1x10x64xf32, #tpu.memory_space<vmem>>, vector<1x10x64xf32>
    %5 = vector.shape_cast %4 : vector<1x10x64xf32> to vector<10x64xf32>
    %6 = vector.extract_strided_slice %5 {offsets = [0, 0], sizes = [1, 32], strides = [1, 1]} : vector<10x64xf32> to vector<1x32xf32>
    %7 = vector.extract_strided_slice %5 {offsets = [1, 0], sizes = [1, 32], strides = [1, 1]} : vector<10x64xf32> to vector<1x32xf32>
    %8 = vector.extract_strided_slice %5 {offsets = [2, 0], sizes = [1, 32], strides = [1, 1]} : vector<10x64xf32> to vector<1x32xf32>
    %9 = vector.extract_strided_slice %5 {offsets = [3, 0], sizes = [1, 32], strides = [1, 1]} : vector<10x64xf32> to vector<1x32xf32>
    %10 = vector.extract_strided_slice %5 {offsets = [4, 0], sizes = [1, 32], strides = [1, 1]} : vector<10x64xf32> to vector<1x32xf32>
    %11 = vector.extract_strided_slice %5 {offsets = [5, 0], sizes = [1, 32], strides = [1, 1]} : vector<10x64xf32> to vector<1x32xf32>
    %12 = vector.extract_strided_slice %5 {offsets = [6, 0], sizes = [1, 64], strides = [1, 1]} : vector<10x64xf32> to vector<1x64xf32>
    %13 = vector.extract_strided_slice %5 {offsets = [7, 0], sizes = [1, 32], strides = [1, 1]} : vector<10x64xf32> to vector<1x32xf32>
    %14 = vector.extract_strided_slice %5 {offsets = [8, 0], sizes = [1, 32], strides = [1, 1]} : vector<10x64xf32> to vector<1x32xf32>
    %15 = vector.extract_strided_slice %5 {offsets = [9, 0], sizes = [1, 32], strides = [1, 1]} : vector<10x64xf32> to vector<1x32xf32>
    %16 = arith.truncf %3 : vector<16x32xf32> to vector<16x32xbf16>
    %c0_5 = arith.constant 0 : index
    %c0_6 = arith.constant 0 : index
    %c0_7 = arith.constant 0 : index
    %17 = vector.load %arg3[%c0_5, %c0_6, %c0_7] : memref<1x32x32xbf16, #tpu.memory_space<vmem>>, vector<1x32x32xbf16>
    %18 = vector.shape_cast %17 : vector<1x32x32xbf16> to vector<32x32xbf16>
    %cst = arith.constant dense<0.000000e+00> : vector<16x32xf32>
    %19 = tpu.matmul %16, %18, %cst {dimension_numbers = #tpu.dot_dimension_numbers<[1], [0], [0], [1], [0, 0, 1, 1], [], []>} : vector<16x32xbf16>, vector<32x32xbf16>, vector<16x32xf32> -> vector<16x32xf32>
    %20 = vector.broadcast %6 : vector<1x32xf32> to vector<16x32xf32>
    %21 = arith.addf %19, %20 : vector<16x32xf32>
    %c0_8 = arith.constant 0 : index
    %c0_9 = arith.constant 0 : index
    %c0_10 = arith.constant 0 : index
    %22 = vector.load %arg4[%c0_8, %c0_9, %c0_10] : memref<1x32x32xbf16, #tpu.memory_space<vmem>>, vector<1x32x32xbf16>
    %23 = vector.shape_cast %22 : vector<1x32x32xbf16> to vector<32x32xbf16>
    %cst_11 = arith.constant dense<0.000000e+00> : vector<16x32xf32>
    %24 = tpu.matmul %16, %23, %cst_11 {dimension_numbers = #tpu.dot_dimension_numbers<[1], [0], [0], [1], [0, 0, 1, 1], [], []>} : vector<16x32xbf16>, vector<32x32xbf16>, vector<16x32xf32> -> vector<16x32xf32>
    %25 = vector.broadcast %7 : vector<1x32xf32> to vector<16x32xf32>
    %26 = arith.addf %24, %25 : vector<16x32xf32>
    %c0_12 = arith.constant 0 : index
    %c0_13 = arith.constant 0 : index
    %c0_14 = arith.constant 0 : index
    %27 = vector.load %arg5[%c0_12, %c0_13, %c0_14] : memref<1x32x32xbf16, #tpu.memory_space<vmem>>, vector<1x32x32xbf16>
    %28 = vector.shape_cast %27 : vector<1x32x32xbf16> to vector<32x32xbf16>
    %cst_15 = arith.constant dense<0.000000e+00> : vector<16x32xf32>
    %29 = tpu.matmul %16, %28, %cst_15 {dimension_numbers = #tpu.dot_dimension_numbers<[1], [0], [0], [1], [0, 0, 1, 1], [], []>} : vector<16x32xbf16>, vector<32x32xbf16>, vector<16x32xf32> -> vector<16x32xf32>
    %30 = vector.broadcast %8 : vector<1x32xf32> to vector<16x32xf32>
    %31 = arith.addf %29, %30 : vector<16x32xf32>
    %cst_16 = arith.constant 0.353553385 : f32
    %32 = vector.broadcast %cst_16 : f32 to vector<16x32xf32>
    %33 = arith.mulf %21, %32 : vector<16x32xf32>
    %34 = arith.truncf %33 : vector<16x32xf32> to vector<16x32xbf16>
    %35 = arith.truncf %26 : vector<16x32xf32> to vector<16x32xbf16>
    %36 = arith.truncf %31 : vector<16x32xf32> to vector<16x32xbf16>
    %c0_17 = arith.constant 0 : index
    %c0_18 = arith.constant 0 : index
    %c0_19 = arith.constant 0 : index
    %37 = vector.load %arg6[%c0_17, %c0_18, %c0_19] : memref<1x32x32xbf16, #tpu.memory_space<vmem>>, vector<1x32x32xbf16>
    %38 = vector.shape_cast %37 : vector<1x32x32xbf16> to vector<32x32xbf16>
    %cst_20 = arith.constant 0.000000e+00 : f32
    %39 = vector.broadcast %cst_20 : f32 to vector<8x32xf32>
    %40 = vector.extract_strided_slice %34 {offsets = [0, 0], sizes = [8, 8], strides = [1, 1]} : vector<16x32xbf16> to vector<8x8xbf16>
    %41 = vector.extract_strided_slice %35 {offsets = [0, 0], sizes = [8, 8], strides = [1, 1]} : vector<16x32xbf16> to vector<8x8xbf16>
    %42 = vector.extract_strided_slice %36 {offsets = [0, 0], sizes = [8, 8], strides = [1, 1]} : vector<16x32xbf16> to vector<8x8xbf16>
    "tpu.trace_start"() <{level = 10 : i32, message = "qd,kd->qk"}> : () -> ()
    %cst_21 = arith.constant dense<0.000000e+00> : vector<8x8xf32>
    %43 = tpu.matmul %40, %41, %cst_21 {dimension_numbers = #tpu.dot_dimension_numbers<[1], [1], [0], [0], [0, 0, 1, 0], [], []>} : vector<8x8xbf16>, vector<8x8xbf16>, vector<8x8xf32> -> vector<8x8xf32>
    "tpu.trace_stop"() : () -> ()
    %cst_22 = arith.constant dense<0xFF800000> : vector<8xf32>
    %44 = vector.multi_reduction <maximumf>, %43, %cst_22 [1] : vector<8x8xf32> to vector<8xf32>
    %45 = vector.shape_cast %44 : vector<8xf32> to vector<8x1xf32>
    %46 = vector.broadcast %45 : vector<8x1xf32> to vector<8x8xf32>
    %47 = arith.subf %43, %46 : vector<8x8xf32>
    %48 = math.exp %47 : vector<8x8xf32>
    %cst_23 = arith.constant dense<0.000000e+00> : vector<8xf32>
    %49 = vector.multi_reduction <add>, %48, %cst_23 [1] : vector<8x8xf32> to vector<8xf32>
    %50 = vector.shape_cast %49 : vector<8xf32> to vector<8x1xf32>
    %51 = tpu.reciprocal %50 : vector<8x1xf32> -> vector<8x1xf32>
    %52 = arith.truncf %48 : vector<8x8xf32> to vector<8x8xbf16>
    %cst_24 = arith.constant dense<0.000000e+00> : vector<8x8xf32>
    %53 = tpu.matmul %52, %42, %cst_24 {dimension_numbers = #tpu.dot_dimension_numbers<[1], [0], [0], [1], [0, 0, 1, 1], [], []>} : vector<8x8xbf16>, vector<8x8xbf16>, vector<8x8xf32> -> vector<8x8xf32>
    %54 = vector.broadcast %51 : vector<8x1xf32> to vector<8x8xf32>
    %55 = arith.mulf %53, %54 : vector<8x8xf32>
    %56 = arith.truncf %55 : vector<8x8xf32> to vector<8x8xbf16>
    %57 = vector.extract_strided_slice %38 {offsets = [0, 0], sizes = [8, 32], strides = [1, 1]} : vector<32x32xbf16> to vector<8x32xbf16>
    %cst_25 = arith.constant dense<0.000000e+00> : vector<8x32xf32>
    %58 = tpu.matmul %56, %57, %cst_25 {dimension_numbers = #tpu.dot_dimension_numbers<[1], [0], [0], [1], [0, 0, 1, 1], [], []>} : vector<8x8xbf16>, vector<8x32xbf16>, vector<8x32xf32> -> vector<8x32xf32>
    %59 = arith.addf %39, %58 : vector<8x32xf32>
    %60 = vector.extract_strided_slice %34 {offsets = [0, 8], sizes = [8, 8], strides = [1, 1]} : vector<16x32xbf16> to vector<8x8xbf16>
    %61 = vector.extract_strided_slice %35 {offsets = [0, 8], sizes = [8, 8], strides = [1, 1]} : vector<16x32xbf16> to vector<8x8xbf16>
    %62 = vector.extract_strided_slice %36 {offsets = [0, 8], sizes = [8, 8], strides = [1, 1]} : vector<16x32xbf16> to vector<8x8xbf16>
    "tpu.trace_start"() <{level = 10 : i32, message = "qd,kd->qk"}> : () -> ()
    %cst_26 = arith.constant dense<0.000000e+00> : vector<8x8xf32>
    %63 = tpu.matmul %60, %61, %cst_26 {dimension_numbers = #tpu.dot_dimension_numbers<[1], [1], [0], [0], [0, 0, 1, 0], [], []>} : vector<8x8xbf16>, vector<8x8xbf16>, vector<8x8xf32> -> vector<8x8xf32>
    "tpu.trace_stop"() : () -> ()
    %cst_27 = arith.constant dense<0xFF800000> : vector<8xf32>
    %64 = vector.multi_reduction <maximumf>, %63, %cst_27 [1] : vector<8x8xf32> to vector<8xf32>
    %65 = vector.shape_cast %64 : vector<8xf32> to vector<8x1xf32>
    %66 = vector.broadcast %65 : vector<8x1xf32> to vector<8x8xf32>
    %67 = arith.subf %63, %66 : vector<8x8xf32>
    %68 = math.exp %67 : vector<8x8xf32>
    %cst_28 = arith.constant dense<0.000000e+00> : vector<8xf32>
    %69 = vector.multi_reduction <add>, %68, %cst_28 [1] : vector<8x8xf32> to vector<8xf32>
    %70 = vector.shape_cast %69 : vector<8xf32> to vector<8x1xf32>
    %71 = tpu.reciprocal %70 : vector<8x1xf32> -> vector<8x1xf32>
    %72 = arith.truncf %68 : vector<8x8xf32> to vector<8x8xbf16>
    %cst_29 = arith.constant dense<0.000000e+00> : vector<8x8xf32>
    %73 = tpu.matmul %72, %62, %cst_29 {dimension_numbers = #tpu.dot_dimension_numbers<[1], [0], [0], [1], [0, 0, 1, 1], [], []>} : vector<8x8xbf16>, vector<8x8xbf16>, vector<8x8xf32> -> vector<8x8xf32>
    %74 = vector.broadcast %71 : vector<8x1xf32> to vector<8x8xf32>
    %75 = arith.mulf %73, %74 : vector<8x8xf32>
    %76 = arith.truncf %75 : vector<8x8xf32> to vector<8x8xbf16>
    %77 = vector.extract_strided_slice %38 {offsets = [8, 0], sizes = [8, 32], strides = [1, 1]} : vector<32x32xbf16> to vector<8x32xbf16>
    %cst_30 = arith.constant dense<0.000000e+00> : vector<8x32xf32>
    %78 = tpu.matmul %76, %77, %cst_30 {dimension_numbers = #tpu.dot_dimension_numbers<[1], [0], [0], [1], [0, 0, 1, 1], [], []>} : vector<8x8xbf16>, vector<8x32xbf16>, vector<8x32xf32> -> vector<8x32xf32>
    %79 = arith.addf %59, %78 : vector<8x32xf32>
    %80 = vector.extract_strided_slice %34 {offsets = [0, 16], sizes = [8, 8], strides = [1, 1]} : vector<16x32xbf16> to vector<8x8xbf16>
    %81 = vector.extract_strided_slice %35 {offsets = [0, 16], sizes = [8, 8], strides = [1, 1]} : vector<16x32xbf16> to vector<8x8xbf16>
    %82 = vector.extract_strided_slice %36 {offsets = [0, 16], sizes = [8, 8], strides = [1, 1]} : vector<16x32xbf16> to vector<8x8xbf16>
    "tpu.trace_start"() <{level = 10 : i32, message = "qd,kd->qk"}> : () -> ()
    %cst_31 = arith.constant dense<0.000000e+00> : vector<8x8xf32>
    %83 = tpu.matmul %80, %81, %cst_31 {dimension_numbers = #tpu.dot_dimension_numbers<[1], [1], [0], [0], [0, 0, 1, 0], [], []>} : vector<8x8xbf16>, vector<8x8xbf16>, vector<8x8xf32> -> vector<8x8xf32>
    "tpu.trace_stop"() : () -> ()
    %cst_32 = arith.constant dense<0xFF800000> : vector<8xf32>
    %84 = vector.multi_reduction <maximumf>, %83, %cst_32 [1] : vector<8x8xf32> to vector<8xf32>
    %85 = vector.shape_cast %84 : vector<8xf32> to vector<8x1xf32>
    %86 = vector.broadcast %85 : vector<8x1xf32> to vector<8x8xf32>
    %87 = arith.subf %83, %86 : vector<8x8xf32>
    %88 = math.exp %87 : vector<8x8xf32>
    %cst_33 = arith.constant dense<0.000000e+00> : vector<8xf32>
    %89 = vector.multi_reduction <add>, %88, %cst_33 [1] : vector<8x8xf32> to vector<8xf32>
    %90 = vector.shape_cast %89 : vector<8xf32> to vector<8x1xf32>
    %91 = tpu.reciprocal %90 : vector<8x1xf32> -> vector<8x1xf32>
    %92 = arith.truncf %88 : vector<8x8xf32> to vector<8x8xbf16>
    %cst_34 = arith.constant dense<0.000000e+00> : vector<8x8xf32>
    %93 = tpu.matmul %92, %82, %cst_34 {dimension_numbers = #tpu.dot_dimension_numbers<[1], [0], [0], [1], [0, 0, 1, 1], [], []>} : vector<8x8xbf16>, vector<8x8xbf16>, vector<8x8xf32> -> vector<8x8xf32>
    %94 = vector.broadcast %91 : vector<8x1xf32> to vector<8x8xf32>
    %95 = arith.mulf %93, %94 : vector<8x8xf32>
    %96 = arith.truncf %95 : vector<8x8xf32> to vector<8x8xbf16>
    %97 = vector.extract_strided_slice %38 {offsets = [16, 0], sizes = [8, 32], strides = [1, 1]} : vector<32x32xbf16> to vector<8x32xbf16>
    %cst_35 = arith.constant dense<0.000000e+00> : vector<8x32xf32>
    %98 = tpu.matmul %96, %97, %cst_35 {dimension_numbers = #tpu.dot_dimension_numbers<[1], [0], [0], [1], [0, 0, 1, 1], [], []>} : vector<8x8xbf16>, vector<8x32xbf16>, vector<8x32xf32> -> vector<8x32xf32>
    %99 = arith.addf %79, %98 : vector<8x32xf32>
    %100 = vector.extract_strided_slice %34 {offsets = [0, 24], sizes = [8, 8], strides = [1, 1]} : vector<16x32xbf16> to vector<8x8xbf16>
    %101 = vector.extract_strided_slice %35 {offsets = [0, 24], sizes = [8, 8], strides = [1, 1]} : vector<16x32xbf16> to vector<8x8xbf16>
    %102 = vector.extract_strided_slice %36 {offsets = [0, 24], sizes = [8, 8], strides = [1, 1]} : vector<16x32xbf16> to vector<8x8xbf16>
    "tpu.trace_start"() <{level = 10 : i32, message = "qd,kd->qk"}> : () -> ()
    %cst_36 = arith.constant dense<0.000000e+00> : vector<8x8xf32>
    %103 = tpu.matmul %100, %101, %cst_36 {dimension_numbers = #tpu.dot_dimension_numbers<[1], [1], [0], [0], [0, 0, 1, 0], [], []>} : vector<8x8xbf16>, vector<8x8xbf16>, vector<8x8xf32> -> vector<8x8xf32>
    "tpu.trace_stop"() : () -> ()
    %cst_37 = arith.constant dense<0xFF800000> : vector<8xf32>
    %104 = vector.multi_reduction <maximumf>, %103, %cst_37 [1] : vector<8x8xf32> to vector<8xf32>
    %105 = vector.shape_cast %104 : vector<8xf32> to vector<8x1xf32>
    %106 = vector.broadcast %105 : vector<8x1xf32> to vector<8x8xf32>
    %107 = arith.subf %103, %106 : vector<8x8xf32>
    %108 = math.exp %107 : vector<8x8xf32>
    %cst_38 = arith.constant dense<0.000000e+00> : vector<8xf32>
    %109 = vector.multi_reduction <add>, %108, %cst_38 [1] : vector<8x8xf32> to vector<8xf32>
    %110 = vector.shape_cast %109 : vector<8xf32> to vector<8x1xf32>
    %111 = tpu.reciprocal %110 : vector<8x1xf32> -> vector<8x1xf32>
    %112 = arith.truncf %108 : vector<8x8xf32> to vector<8x8xbf16>
    %cst_39 = arith.constant dense<0.000000e+00> : vector<8x8xf32>
    %113 = tpu.matmul %112, %102, %cst_39 {dimension_numbers = #tpu.dot_dimension_numbers<[1], [0], [0], [1], [0, 0, 1, 1], [], []>} : vector<8x8xbf16>, vector<8x8xbf16>, vector<8x8xf32> -> vector<8x8xf32>
    %114 = vector.broadcast %111 : vector<8x1xf32> to vector<8x8xf32>
    %115 = arith.mulf %113, %114 : vector<8x8xf32>
    %116 = arith.truncf %115 : vector<8x8xf32> to vector<8x8xbf16>
    %117 = vector.extract_strided_slice %38 {offsets = [24, 0], sizes = [8, 32], strides = [1, 1]} : vector<32x32xbf16> to vector<8x32xbf16>
    %cst_40 = arith.constant dense<0.000000e+00> : vector<8x32xf32>
    %118 = tpu.matmul %116, %117, %cst_40 {dimension_numbers = #tpu.dot_dimension_numbers<[1], [0], [0], [1], [0, 0, 1, 1], [], []>} : vector<8x8xbf16>, vector<8x32xbf16>, vector<8x32xf32> -> vector<8x32xf32>
    %119 = arith.addf %99, %118 : vector<8x32xf32>
    %cst_41 = arith.constant 0.000000e+00 : f32
    %120 = vector.broadcast %cst_41 : f32 to vector<8x32xf32>
    %121 = vector.extract_strided_slice %34 {offsets = [8, 0], sizes = [8, 8], strides = [1, 1]} : vector<16x32xbf16> to vector<8x8xbf16>
    %122 = vector.extract_strided_slice %35 {offsets = [8, 0], sizes = [8, 8], strides = [1, 1]} : vector<16x32xbf16> to vector<8x8xbf16>
    %123 = vector.extract_strided_slice %36 {offsets = [8, 0], sizes = [8, 8], strides = [1, 1]} : vector<16x32xbf16> to vector<8x8xbf16>
    "tpu.trace_start"() <{level = 10 : i32, message = "qd,kd->qk"}> : () -> ()
    %cst_42 = arith.constant dense<0.000000e+00> : vector<8x8xf32>
    %124 = tpu.matmul %121, %122, %cst_42 {dimension_numbers = #tpu.dot_dimension_numbers<[1], [1], [0], [0], [0, 0, 1, 0], [], []>} : vector<8x8xbf16>, vector<8x8xbf16>, vector<8x8xf32> -> vector<8x8xf32>
    "tpu.trace_stop"() : () -> ()
    %cst_43 = arith.constant dense<0xFF800000> : vector<8xf32>
    %125 = vector.multi_reduction <maximumf>, %124, %cst_43 [1] : vector<8x8xf32> to vector<8xf32>
    %126 = vector.shape_cast %125 : vector<8xf32> to vector<8x1xf32>
    %127 = vector.broadcast %126 : vector<8x1xf32> to vector<8x8xf32>
    %128 = arith.subf %124, %127 : vector<8x8xf32>
    %129 = math.exp %128 : vector<8x8xf32>
    %cst_44 = arith.constant dense<0.000000e+00> : vector<8xf32>
    %130 = vector.multi_reduction <add>, %129, %cst_44 [1] : vector<8x8xf32> to vector<8xf32>
    %131 = vector.shape_cast %130 : vector<8xf32> to vector<8x1xf32>
    %132 = tpu.reciprocal %131 : vector<8x1xf32> -> vector<8x1xf32>
    %133 = arith.truncf %129 : vector<8x8xf32> to vector<8x8xbf16>
    %cst_45 = arith.constant dense<0.000000e+00> : vector<8x8xf32>
    %134 = tpu.matmul %133, %123, %cst_45 {dimension_numbers = #tpu.dot_dimension_numbers<[1], [0], [0], [1], [0, 0, 1, 1], [], []>} : vector<8x8xbf16>, vector<8x8xbf16>, vector<8x8xf32> -> vector<8x8xf32>
    %135 = vector.broadcast %132 : vector<8x1xf32> to vector<8x8xf32>
    %136 = arith.mulf %134, %135 : vector<8x8xf32>
    %137 = arith.truncf %136 : vector<8x8xf32> to vector<8x8xbf16>
    %138 = vector.extract_strided_slice %38 {offsets = [0, 0], sizes = [8, 32], strides = [1, 1]} : vector<32x32xbf16> to vector<8x32xbf16>
    %cst_46 = arith.constant dense<0.000000e+00> : vector<8x32xf32>
    %139 = tpu.matmul %137, %138, %cst_46 {dimension_numbers = #tpu.dot_dimension_numbers<[1], [0], [0], [1], [0, 0, 1, 1], [], []>} : vector<8x8xbf16>, vector<8x32xbf16>, vector<8x32xf32> -> vector<8x32xf32>
    %140 = arith.addf %120, %139 : vector<8x32xf32>
    %141 = vector.extract_strided_slice %34 {offsets = [8, 8], sizes = [8, 8], strides = [1, 1]} : vector<16x32xbf16> to vector<8x8xbf16>
    %142 = vector.extract_strided_slice %35 {offsets = [8, 8], sizes = [8, 8], strides = [1, 1]} : vector<16x32xbf16> to vector<8x8xbf16>
    %143 = vector.extract_strided_slice %36 {offsets = [8, 8], sizes = [8, 8], strides = [1, 1]} : vector<16x32xbf16> to vector<8x8xbf16>
    "tpu.trace_start"() <{level = 10 : i32, message = "qd,kd->qk"}> : () -> ()
    %cst_47 = arith.constant dense<0.000000e+00> : vector<8x8xf32>
    %144 = tpu.matmul %141, %142, %cst_47 {dimension_numbers = #tpu.dot_dimension_numbers<[1], [1], [0], [0], [0, 0, 1, 0], [], []>} : vector<8x8xbf16>, vector<8x8xbf16>, vector<8x8xf32> -> vector<8x8xf32>
    "tpu.trace_stop"() : () -> ()
    %cst_48 = arith.constant dense<0xFF800000> : vector<8xf32>
    %145 = vector.multi_reduction <maximumf>, %144, %cst_48 [1] : vector<8x8xf32> to vector<8xf32>
    %146 = vector.shape_cast %145 : vector<8xf32> to vector<8x1xf32>
    %147 = vector.broadcast %146 : vector<8x1xf32> to vector<8x8xf32>
    %148 = arith.subf %144, %147 : vector<8x8xf32>
    %149 = math.exp %148 : vector<8x8xf32>
    %cst_49 = arith.constant dense<0.000000e+00> : vector<8xf32>
    %150 = vector.multi_reduction <add>, %149, %cst_49 [1] : vector<8x8xf32> to vector<8xf32>
    %151 = vector.shape_cast %150 : vector<8xf32> to vector<8x1xf32>
    %152 = tpu.reciprocal %151 : vector<8x1xf32> -> vector<8x1xf32>
    %153 = arith.truncf %149 : vector<8x8xf32> to vector<8x8xbf16>
    %cst_50 = arith.constant dense<0.000000e+00> : vector<8x8xf32>
    %154 = tpu.matmul %153, %143, %cst_50 {dimension_numbers = #tpu.dot_dimension_numbers<[1], [0], [0], [1], [0, 0, 1, 1], [], []>} : vector<8x8xbf16>, vector<8x8xbf16>, vector<8x8xf32> -> vector<8x8xf32>
    %155 = vector.broadcast %152 : vector<8x1xf32> to vector<8x8xf32>
    %156 = arith.mulf %154, %155 : vector<8x8xf32>
    %157 = arith.truncf %156 : vector<8x8xf32> to vector<8x8xbf16>
    %158 = vector.extract_strided_slice %38 {offsets = [8, 0], sizes = [8, 32], strides = [1, 1]} : vector<32x32xbf16> to vector<8x32xbf16>
    %cst_51 = arith.constant dense<0.000000e+00> : vector<8x32xf32>
    %159 = tpu.matmul %157, %158, %cst_51 {dimension_numbers = #tpu.dot_dimension_numbers<[1], [0], [0], [1], [0, 0, 1, 1], [], []>} : vector<8x8xbf16>, vector<8x32xbf16>, vector<8x32xf32> -> vector<8x32xf32>
    %160 = arith.addf %140, %159 : vector<8x32xf32>
    %161 = vector.extract_strided_slice %34 {offsets = [8, 16], sizes = [8, 8], strides = [1, 1]} : vector<16x32xbf16> to vector<8x8xbf16>
    %162 = vector.extract_strided_slice %35 {offsets = [8, 16], sizes = [8, 8], strides = [1, 1]} : vector<16x32xbf16> to vector<8x8xbf16>
    %163 = vector.extract_strided_slice %36 {offsets = [8, 16], sizes = [8, 8], strides = [1, 1]} : vector<16x32xbf16> to vector<8x8xbf16>
    "tpu.trace_start"() <{level = 10 : i32, message = "qd,kd->qk"}> : () -> ()
    %cst_52 = arith.constant dense<0.000000e+00> : vector<8x8xf32>
    %164 = tpu.matmul %161, %162, %cst_52 {dimension_numbers = #tpu.dot_dimension_numbers<[1], [1], [0], [0], [0, 0, 1, 0], [], []>} : vector<8x8xbf16>, vector<8x8xbf16>, vector<8x8xf32> -> vector<8x8xf32>
    "tpu.trace_stop"() : () -> ()
    %cst_53 = arith.constant dense<0xFF800000> : vector<8xf32>
    %165 = vector.multi_reduction <maximumf>, %164, %cst_53 [1] : vector<8x8xf32> to vector<8xf32>
    %166 = vector.shape_cast %165 : vector<8xf32> to vector<8x1xf32>
    %167 = vector.broadcast %166 : vector<8x1xf32> to vector<8x8xf32>
    %168 = arith.subf %164, %167 : vector<8x8xf32>
    %169 = math.exp %168 : vector<8x8xf32>
    %cst_54 = arith.constant dense<0.000000e+00> : vector<8xf32>
    %170 = vector.multi_reduction <add>, %169, %cst_54 [1] : vector<8x8xf32> to vector<8xf32>
    %171 = vector.shape_cast %170 : vector<8xf32> to vector<8x1xf32>
    %172 = tpu.reciprocal %171 : vector<8x1xf32> -> vector<8x1xf32>
    %173 = arith.truncf %169 : vector<8x8xf32> to vector<8x8xbf16>
    %cst_55 = arith.constant dense<0.000000e+00> : vector<8x8xf32>
    %174 = tpu.matmul %173, %163, %cst_55 {dimension_numbers = #tpu.dot_dimension_numbers<[1], [0], [0], [1], [0, 0, 1, 1], [], []>} : vector<8x8xbf16>, vector<8x8xbf16>, vector<8x8xf32> -> vector<8x8xf32>
    %175 = vector.broadcast %172 : vector<8x1xf32> to vector<8x8xf32>
    %176 = arith.mulf %174, %175 : vector<8x8xf32>
    %177 = arith.truncf %176 : vector<8x8xf32> to vector<8x8xbf16>
    %178 = vector.extract_strided_slice %38 {offsets = [16, 0], sizes = [8, 32], strides = [1, 1]} : vector<32x32xbf16> to vector<8x32xbf16>
    %cst_56 = arith.constant dense<0.000000e+00> : vector<8x32xf32>
    %179 = tpu.matmul %177, %178, %cst_56 {dimension_numbers = #tpu.dot_dimension_numbers<[1], [0], [0], [1], [0, 0, 1, 1], [], []>} : vector<8x8xbf16>, vector<8x32xbf16>, vector<8x32xf32> -> vector<8x32xf32>
    %180 = arith.addf %160, %179 : vector<8x32xf32>
    %181 = vector.extract_strided_slice %34 {offsets = [8, 24], sizes = [8, 8], strides = [1, 1]} : vector<16x32xbf16> to vector<8x8xbf16>
    %182 = vector.extract_strided_slice %35 {offsets = [8, 24], sizes = [8, 8], strides = [1, 1]} : vector<16x32xbf16> to vector<8x8xbf16>
    %183 = vector.extract_strided_slice %36 {offsets = [8, 24], sizes = [8, 8], strides = [1, 1]} : vector<16x32xbf16> to vector<8x8xbf16>
    "tpu.trace_start"() <{level = 10 : i32, message = "qd,kd->qk"}> : () -> ()
    %cst_57 = arith.constant dense<0.000000e+00> : vector<8x8xf32>
    %184 = tpu.matmul %181, %182, %cst_57 {dimension_numbers = #tpu.dot_dimension_numbers<[1], [1], [0], [0], [0, 0, 1, 0], [], []>} : vector<8x8xbf16>, vector<8x8xbf16>, vector<8x8xf32> -> vector<8x8xf32>
    "tpu.trace_stop"() : () -> ()
    %cst_58 = arith.constant dense<0xFF800000> : vector<8xf32>
    %185 = vector.multi_reduction <maximumf>, %184, %cst_58 [1] : vector<8x8xf32> to vector<8xf32>
    %186 = vector.shape_cast %185 : vector<8xf32> to vector<8x1xf32>
    %187 = vector.broadcast %186 : vector<8x1xf32> to vector<8x8xf32>
    %188 = arith.subf %184, %187 : vector<8x8xf32>
    %189 = math.exp %188 : vector<8x8xf32>
    %cst_59 = arith.constant dense<0.000000e+00> : vector<8xf32>
    %190 = vector.multi_reduction <add>, %189, %cst_59 [1] : vector<8x8xf32> to vector<8xf32>
    %191 = vector.shape_cast %190 : vector<8xf32> to vector<8x1xf32>
    %192 = tpu.reciprocal %191 : vector<8x1xf32> -> vector<8x1xf32>
    %193 = arith.truncf %189 : vector<8x8xf32> to vector<8x8xbf16>
    %cst_60 = arith.constant dense<0.000000e+00> : vector<8x8xf32>
    %194 = tpu.matmul %193, %183, %cst_60 {dimension_numbers = #tpu.dot_dimension_numbers<[1], [0], [0], [1], [0, 0, 1, 1], [], []>} : vector<8x8xbf16>, vector<8x8xbf16>, vector<8x8xf32> -> vector<8x8xf32>
    %195 = vector.broadcast %192 : vector<8x1xf32> to vector<8x8xf32>
    %196 = arith.mulf %194, %195 : vector<8x8xf32>
    %197 = arith.truncf %196 : vector<8x8xf32> to vector<8x8xbf16>
    %198 = vector.extract_strided_slice %38 {offsets = [24, 0], sizes = [8, 32], strides = [1, 1]} : vector<32x32xbf16> to vector<8x32xbf16>
    %cst_61 = arith.constant dense<0.000000e+00> : vector<8x32xf32>
    %199 = tpu.matmul %197, %198, %cst_61 {dimension_numbers = #tpu.dot_dimension_numbers<[1], [0], [0], [1], [0, 0, 1, 1], [], []>} : vector<8x8xbf16>, vector<8x32xbf16>, vector<8x32xf32> -> vector<8x32xf32>
    %200 = arith.addf %180, %199 : vector<8x32xf32>
    %201 = tpu.concatenate %119, %200 in 0 : vector<8x32xf32>, vector<8x32xf32> -> vector<16x32xf32>
    %202 = vector.broadcast %9 : vector<1x32xf32> to vector<16x32xf32>
    %203 = arith.addf %201, %202 : vector<16x32xf32>
    %204 = arith.addf %3, %203 : vector<16x32xf32>
    %cst_62 = arith.constant dense<0.000000e+00> : vector<16xf32>
    %205 = vector.multi_reduction <add>, %204, %cst_62 [1] : vector<16x32xf32> to vector<16xf32>
    %206 = vector.shape_cast %205 : vector<16xf32> to vector<16x1xf32>
    %cst_63 = arith.constant 3.200000e+01 : f32
    %207 = vector.broadcast %cst_63 : f32 to vector<16x1xf32>
    %208 = arith.divf %206, %207 : vector<16x1xf32>
    %209 = vector.broadcast %208 : vector<16x1xf32> to vector<16x32xf32>
    %210 = arith.subf %204, %209 : vector<16x32xf32>
    %211 = arith.mulf %210, %210 : vector<16x32xf32>
    %cst_64 = arith.constant dense<0.000000e+00> : vector<16xf32>
    %212 = vector.multi_reduction <add>, %211, %cst_64 [1] : vector<16x32xf32> to vector<16xf32>
    %213 = vector.shape_cast %212 : vector<16xf32> to vector<16x1xf32>
    %cst_65 = arith.constant 3.200000e+01 : f32
    %214 = vector.broadcast %cst_65 : f32 to vector<16x1xf32>
    %215 = arith.divf %213, %214 : vector<16x1xf32>
    %216 = vector.broadcast %208 : vector<16x1xf32> to vector<16x32xf32>
    %217 = arith.subf %204, %216 : vector<16x32xf32>
    %cst_66 = arith.constant 9.99999974E-6 : f32
    %218 = vector.broadcast %cst_66 : f32 to vector<16x1xf32>
    %219 = arith.addf %215, %218 : vector<16x1xf32>
    %220 = math.rsqrt %219 : vector<16x1xf32>
    %221 = vector.broadcast %220 : vector<16x1xf32> to vector<16x32xf32>
    %222 = arith.mulf %217, %221 : vector<16x32xf32>
    %223 = vector.broadcast %10 : vector<1x32xf32> to vector<16x32xf32>
    %224 = arith.mulf %222, %223 : vector<16x32xf32>
    %225 = vector.broadcast %11 : vector<1x32xf32> to vector<16x32xf32>
    %226 = arith.addf %224, %225 : vector<16x32xf32>
    %227 = arith.truncf %226 : vector<16x32xf32> to vector<16x32xbf16>
    %c0_67 = arith.constant 0 : index
    %c0_68 = arith.constant 0 : index
    %c0_69 = arith.constant 0 : index
    %228 = vector.load %arg7[%c0_67, %c0_68, %c0_69] : memref<1x32x64xbf16, #tpu.memory_space<vmem>>, vector<1x32x64xbf16>
    %229 = vector.shape_cast %228 : vector<1x32x64xbf16> to vector<32x64xbf16>
    %cst_70 = arith.constant dense<0.000000e+00> : vector<16x64xf32>
    %230 = tpu.matmul %227, %229, %cst_70 {dimension_numbers = #tpu.dot_dimension_numbers<[1], [0], [0], [1], [0, 0, 1, 1], [], []>} : vector<16x32xbf16>, vector<32x64xbf16>, vector<16x64xf32> -> vector<16x64xf32>
    %231 = vector.broadcast %12 : vector<1x64xf32> to vector<16x64xf32>
    %232 = arith.addf %230, %231 : vector<16x64xf32>
    %cst_71 = arith.constant 0.000000e+00 : f32
    %233 = vector.broadcast %cst_71 : f32 to vector<16x64xf32>
    %234 = arith.maximumf %232, %233 : vector<16x64xf32>
    %235 = arith.truncf %234 : vector<16x64xf32> to vector<16x64xbf16>
    %c0_72 = arith.constant 0 : index
    %c0_73 = arith.constant 0 : index
    %c0_74 = arith.constant 0 : index
    %236 = vector.load %arg8[%c0_72, %c0_73, %c0_74] : memref<1x64x32xbf16, #tpu.memory_space<vmem>>, vector<1x64x32xbf16>
    %237 = vector.shape_cast %236 : vector<1x64x32xbf16> to vector<64x32xbf16>
    %cst_75 = arith.constant dense<0.000000e+00> : vector<16x32xf32>
    %238 = tpu.matmul %235, %237, %cst_75 {dimension_numbers = #tpu.dot_dimension_numbers<[1], [0], [0], [1], [0, 0, 1, 1], [], []>} : vector<16x64xbf16>, vector<64x32xbf16>, vector<16x32xf32> -> vector<16x32xf32>
    %239 = vector.broadcast %13 : vector<1x32xf32> to vector<16x32xf32>
    %240 = arith.addf %238, %239 : vector<16x32xf32>
    %241 = arith.addf %226, %240 : vector<16x32xf32>
    %cst_76 = arith.constant dense<0.000000e+00> : vector<16xf32>
    %242 = vector.multi_reduction <add>, %241, %cst_76 [1] : vector<16x32xf32> to vector<16xf32>
    %243 = vector.shape_cast %242 : vector<16xf32> to vector<16x1xf32>
    %cst_77 = arith.constant 3.200000e+01 : f32
    %244 = vector.broadcast %cst_77 : f32 to vector<16x1xf32>
    %245 = arith.divf %243, %244 : vector<16x1xf32>
    %246 = vector.broadcast %245 : vector<16x1xf32> to vector<16x32xf32>
    %247 = arith.subf %241, %246 : vector<16x32xf32>
    %248 = arith.mulf %247, %247 : vector<16x32xf32>
    %cst_78 = arith.constant dense<0.000000e+00> : vector<16xf32>
    %249 = vector.multi_reduction <add>, %248, %cst_78 [1] : vector<16x32xf32> to vector<16xf32>
    %250 = vector.shape_cast %249 : vector<16xf32> to vector<16x1xf32>
    %cst_79 = arith.constant 3.200000e+01 : f32
    %251 = vector.broadcast %cst_79 : f32 to vector<16x1xf32>
    %252 = arith.divf %250, %251 : vector<16x1xf32>
    %253 = vector.broadcast %245 : vector<16x1xf32> to vector<16x32xf32>
    %254 = arith.subf %241, %253 : vector<16x32xf32>
    %cst_80 = arith.constant 9.99999974E-6 : f32
    %255 = vector.broadcast %cst_80 : f32 to vector<16x1xf32>
    %256 = arith.addf %252, %255 : vector<16x1xf32>
    %257 = math.rsqrt %256 : vector<16x1xf32>
    %258 = vector.broadcast %257 : vector<16x1xf32> to vector<16x32xf32>
    %259 = arith.mulf %254, %258 : vector<16x32xf32>
    %260 = vector.broadcast %14 : vector<1x32xf32> to vector<16x32xf32>
    %261 = arith.mulf %259, %260 : vector<16x32xf32>
    %262 = vector.broadcast %15 : vector<1x32xf32> to vector<16x32xf32>
    %263 = arith.addf %261, %262 : vector<16x32xf32>
    %c0_81 = arith.constant 0 : index
    %c0_82 = arith.constant 0 : index
    %264 = vector.load %arg11[%c0_81, %c0_82] : memref<16x32xf32, #tpu.memory_space<vmem>>, vector<16x32xf32>
    tpu.vector_store %arg11[%c0_81, %c0_82], %263 {strides = array<i32>} : memref<16x32xf32, #tpu.memory_space<vmem>>, vector<16x32xf32>,
    %c1_i32 = arith.constant 1 : i32
    %265 = arith.cmpi eq, %arg1, %c1_i32 : i32
    %266 = arith.extui %265 : i1 to i32
    %c0_i32_83 = arith.constant 0 : i32
    %267 = arith.cmpi ne, %266, %c0_i32_83 : i32
    scf.if %267 {
      %268 = vector.shape_cast %263 : vector<16x32xf32> to vector<2x8x32xf32>
      %c0_84 = arith.constant 0 : index
      %c0_85 = arith.constant 0 : index
      %c0_86 = arith.constant 0 : index
      %269 = vector.load %arg10[%c0_84, %c0_85, %c0_86] : memref<2x8x32xf32, #tpu.memory_space<vmem>>, vector<2x8x32xf32>
      tpu.vector_store %arg10[%c0_84, %c0_85, %c0_86], %268 {strides = array<i32>} : memref<2x8x32xf32, #tpu.memory_space<vmem>>, vector<2x8x32xf32>,
    } else {
    }
    return
  }
  func.func @transform_0(%arg0: i32, %arg1: i32) -> (i32, i32, i32) {
    %c0_i32 = arith.constant 0 : i32
    %c0_i32_0 = arith.constant 0 : i32
    %c0_i32_1 = arith.constant 0 : i32
    return %arg0, %c0_i32, %c0_i32_0 : i32, i32, i32
  }
  func.func @transform_1(%arg0: i32, %arg1: i32) -> (i32, i32, i32) {
    %c0_i32 = arith.constant 0 : i32
    %c0_i32_0 = arith.constant 0 : i32
    %c0_i32_1 = arith.constant 0 : i32
    return %arg1, %c0_i32, %c0_i32_0 : i32, i32, i32
  }
  func.func @transform_2(%arg0: i32, %arg1: i32) -> (i32, i32, i32) {
    %c0_i32 = arith.constant 0 : i32
    %c0_i32_0 = arith.constant 0 : i32
    %c0_i32_1 = arith.constant 0 : i32
    return %arg1, %c0_i32, %c0_i32_0 : i32, i32, i32
  }
  func.func @transform_3(%arg0: i32, %arg1: i32) -> (i32, i32, i32) {
    %c0_i32 = arith.constant 0 : i32
    %c0_i32_0 = arith.constant 0 : i32
    %c0_i32_1 = arith.constant 0 : i32
    return %arg1, %c0_i32, %c0_i32_0 : i32, i32, i32
  }
  func.func @transform_4(%arg0: i32, %arg1: i32) -> (i32, i32, i32) {
    %c0_i32 = arith.constant 0 : i32
    %c0_i32_0 = arith.constant 0 : i32
    %c0_i32_1 = arith.constant 0 : i32
    return %arg1, %c0_i32, %c0_i32_0 : i32, i32, i32
  }
  func.func @transform_5(%arg0: i32, %arg1: i32) -> (i32, i32, i32) {
    %c0_i32 = arith.constant 0 : i32
    %c0_i32_0 = arith.constant 0 : i32
    %c0_i32_1 = arith.constant 0 : i32
    return %arg1, %c0_i32, %c0_i32_0 : i32, i32, i32
  }
  func.func @transform_6(%arg0: i32, %arg1: i32) -> (i32, i32, i32) {
    %c0_i32 = arith.constant 0 : i32
    %c0_i32_0 = arith.constant 0 : i32
    %c0_i32_1 = arith.constant 0 : i32
    return %arg1, %c0_i32, %c0_i32_0 : i32, i32, i32
  }
  func.func @transform_7(%arg0: i32, %arg1: i32) -> (i32, i32, i32) {
    %c0_i32 = arith.constant 0 : i32
    %c0_i32_0 = arith.constant 0 : i32
    %c0_i32_1 = arith.constant 0 : i32
    return %arg1, %c0_i32, %c0_i32_0 : i32, i32, i32
  }
  func.func @transform_8(%arg0: i32, %arg1: i32) -> (i32, i32, i32) {
    %c0_i32 = arith.constant 0 : i32
    %c0_i32_0 = arith.constant 0 : i32
    %c0_i32_1 = arith.constant 0 : i32
    return %arg0, %c0_i32, %c0_i32_0 : i32, i32, i32
  }
}

</mosaic_0001>

<bundles_post_ra>
// kernel: tpu_custom_call.1
= control target key start
LH: loop header
LB: loop body
LE: loop exit
PB: predicated region body
PF: predicated region fallthrough
CT: control target
= control target key end

     0   :  { %s3500_s0 = inlined_call_operand.vmem [shape: f32[2,8,32], index: 0, kind: input, shape index: {}]   ;;  %s3501_s1 = inlined_call_operand.vmem [shape: bf16[2,32,32], index: 1, kind: input, shape index: {}]   ;;  %s3502_s2 = inlined_call_operand.vmem [shape: bf16[2,32,32], index: 2, kind: input, shape index: {}]   ;;  %s3503_s3 = inlined_call_operand.vmem [shape: bf16[2,32,32], index: 3, kind: input, shape index: {}]   ;;  %s3504_s4 = inlined_call_operand.hbm [shape: bf16[2,32,32], index: 4, kind: input, shape index: {}]   ;;  %s3505_s5 = inlined_call_operand.hbm [shape: bf16[2,32,64], index: 5, kind: input, shape index: {}]   ;;  %s3506_s6 = inlined_call_operand.vmem [shape: bf16[2,64,32], index: 6, kind: input, shape index: {}]   ;;  %s3507_s7 = inlined_call_operand.vmem [shape: f32[2,10,64], index: 7, kind: input, shape index: {}]   ;;  %s3508_s8 = inlined_call_operand.hbm [shape: f32[2,8,32], index: 8, kind: output, shape index: {}]  }
   0x1   :  { %3511 = sst [smem:[#allocation14_spill]] %s3504_s4 }
   0x2   :  { %3512 = sst [smem:[#allocation15_spill]] %s3505_s5 }
   0x3   :  { %13 = vsyncpa [#allocation4], 0 }
   0x4   :  { %15 = vsyncpa [#allocation4 + $0x1], 0 }
   0x5   :  { %16 = vsyncpa [#allocation7], 0 }
   0x6   :  { %18 = vsyncpa [#allocation7 + $0x1], 0 }
   0x7   :  { %19 = vsyncpa [#allocation5], 0  ;;  %s3017_s27 = smov 0   ;;  %s3019_s28 = smov 0  }
   0x8   :  { %s3021_s29 = smov 0   ;;  %s3023_s30 = smov 0  }
   0x9   :  { %s3025_s9 = smov 0   ;;  %s3027_s10 = smov 0  }
   0xa LB: > { %s3509_s11 = sadd.s32 4294967295, %s2958_s10   ;;  %s34_s12 = sadd.s32 1, %s2954_s9  ;;  %s2958_s10 = sphi %s3027_s10, %s25_s10   ;;  %s2954_s9 = sphi %s3025_s9, %s3529_s9   ;;  %s2950_s30 = sphi %s3023_s30, %s3528_s30   ;;  %s2946_s29 = sphi %s3021_s29, %s3527_s29   ;;  %s2942_s28 = sphi %s3019_s28, %s3526_s28   ;;  %s2938_s27 = sphi %s3017_s27, %s3525_s27  }
   0xb   : > { %p35_p0 = scmp.ge.s32.totalorder %s34_s12, 2  ;;  %s148_s13 = sadd.s32 1, %s2946_s29 }
   0xc   : > { %p155_p1 = scmp.ne.s32.totalorder %s2946_s29, %s2942_s28  ;;  %p156_p2 = scmp.eq.s32.totalorder %s2958_s10, 0 }
   0xd   : > { %s3531_s12 = smov (%p35_p0, %s34_s12), 0  ;;  %p161_p4 = scmp.ne.s32.totalorder %s2942_s28, %s2938_s27 }
   0xe   : > { %3513 = sst [smem:[#allocation12_spill]] %s3531_s12  ;;  %p3053_p3 = por %p156_p2, %p155_p1 }
   0xf   : > { %s145_s15 = ssub.s32 %s2954_s9, %s3531_s12  ;;  %p162_p5 = scmp.eq.s32.totalorder %s3509_s11, 0 }
  0x10   : > { %p146_p6 = scmp.eq.s32.totalorder %s145_s15, 0  ;;  %p2707_p8 = scmp.lt.s32.totalorder %s2958_s10, 2 }
  0x11   : > { %p3062_p7 = por %p162_p5, %p161_p4  ;;  %s3071_s18 = sand.u32 1, %s2946_s29  }
  0x12   : > { %s3068_s17 = scalar_select %p146_p6, %s2946_s29, %s148_s13  }
  0x13   : > { %s2432_s19 = sshll.u32 %s2954_s9, 8  ;;  %s2366_s20 = sshll.u32 %s3071_s18, 4 }
  0x14   : > { %3516 = sst [smem:[#allocation13_spill]] %s3068_s17  ;;  %s326_s24 = scalar_lea.vmem [#allocation3], %s2366_s20 }
  0x15   : > { %s3517_s4 = sld [smem:[#allocation14_spill]]  ;;  %s333_s25 = sshll.u32 %s326_s24, 4  ;;  %s334_s25 = int_to_ptr.vmem [resolvable:$true] %s333_s25 }
  0x16   : > { %p3082_p9 = pnand %p2707_p8, %p3053_p3  ;;  %s323_s27 = scalar_lea.sflag [#allocation4], %s3071_s18 }
  0x17   : > { %s2833_s13 = scalar_lea.vmem %s334_s25, 256  ;;  %s2960_s15 = smov [#allocation3]  }
  0x18   : > { %p2822_p10 = pneg %p3082_p9  ;;  %p2834_p11 = scmp.ne.s32.totalorder %s334_s25, %s2833_s13 }
  0x19   : > { %s2838_s21 = sshll.u32 %s2960_s15, 4  ;;  %s2839_s21 = int_to_ptr.vmem [resolvable:$false] %s2838_s21 }
  0x1a   : > { %p2836_p12 = pnand %p2834_p11, %p2822_p10  ;;  %s2840_s14 = scalar_lea.vmem %s2839_s21, 512 }
  0x1b   : > { %s332_s23 = scalar_lea.hbm %s3517_s4, %s2432_s19  ;;  %p2841_p0 = scmp.lt.s32.totalorder %s334_s25, %s2839_s21 }
  0x1c   : > { %p2837_p13 = pneg %p2836_p12  ;;  %p2842_p1 = scmp.lt.s32.totalorder %s2840_s14, %s2833_s13 }
  0x1e   : > { %p2843_p2 = por %p2842_p1, %p2841_p0 }
  0x20   : > { %p2844_p3 = pnand %p2843_p2, %p2837_p13 }
  0x22   : > { %2847 = shalt.err (!%p2844_p3)
}
  0x23   : > { %s2961_s22 = smov 64   ;;  %s2962_s24 = smov 4  }
  0x24   : > { %2703 = dma.hbm_to_vmem [thread:$0]  (!%p3082_p9), %s332_s23, 256, %s334_s25, %s323_s27, %s2961_s22, %s2961_s22, %s2962_s24  }
  0x25   : > { %p2372_p4 = scmp.ge.s32.totalorder %s2958_s10, 1  ;;  %p378_p5 = scmp.lt.s32.totalorder %s2958_s10, 3 }
  0x26   : > { %s3520_s5 = sld [smem:[#allocation15_spill]]  ;;  %s347_s11 = scalar_lea.vmem [#allocation6], %s2366_s20 }
  0x27   : > { %p3096_p6 = pnand %p2372_p4, %p378_p5  ;;  %s354_s4 = sshll.u32 %s347_s11, 4  ;;  %s355_s4 = int_to_ptr.vmem [resolvable:$true] %s354_s4 }
  0x28   : > { %s344_s12 = scalar_lea.sflag [#allocation7], %s3071_s18  ;;  %s2861_s17 = scalar_lea.vmem %s355_s4, 256 }
  0x29   : > { %p2862_p8 = scmp.ne.s32.totalorder %s355_s4, %s2861_s17  ;;  %s2963_s23 = smov [#allocation6]  }
  0x2a   : > { %s2866_s25 = sshll.u32 %s2963_s23, 4  ;;  %s2867_s25 = int_to_ptr.vmem [resolvable:$false] %s2866_s25 }
  0x2b   : > { %p2864_p11 = pnand %p2862_p8, %p2822_p10  ;;  %s2868_s27 = scalar_lea.vmem %s2867_s25, 512 }
  0x2c   : > { %s353_s14 = scalar_lea.hbm %s3520_s5, %s2432_s19  ;;  %p2869_p13 = scmp.lt.s32.totalorder %s355_s4, %s2867_s25 }
  0x2d   : > { %p2865_p12 = pneg %p2864_p11  ;;  %p2870_p0 = scmp.lt.s32.totalorder %s2868_s27, %s2861_s17 }
  0x2f   : > { %p2871_p1 = por %p2870_p0, %p2869_p13 }
  0x31   : > { %p2872_p2 = pnand %p2871_p1, %p2865_p12 }
  0x33   : > { %2875 = shalt.err (!%p2872_p2)
}
  0x34   : > { %2706 = dma.hbm_to_vmem [thread:$0]  (!%p3082_p9), %s353_s14, 256, %s355_s4, %s344_s12, %s2961_s22, %s2961_s22, %s2962_s24  }
  0x35   : > { %382 = sbr.rel (%p3096_p6) target bundleno = 4402 (0x1132), region = 52  ;;  %s384_s11 = sand.u32 (!%p3096_p6), 1, %s2942_s28  }
  0x36   : > { %s2373_s18 = sshll.u32 (!%p3096_p6), %s384_s11, 4  ;;  %s385_s19 = scalar_lea.sflag (!%p3096_p6), [#allocation4], %s384_s11 }
  0x37   : > { %s3114_s20 = scalar_lea.vmem (!%p3096_p6), [#allocation3], %s2373_s18 }
  0x3a   : > { %2925 = dma.done.wait (%p3062_p7), %s385_s19, 256  }
  0x3b   : > { %2927 = vsyncadd (%p3062_p7), %s385_s19, 4294967040  ;;  %s394_s17 = scalar_lea.sflag [#allocation7], %s384_s11  ;;  %s3120_s13 = scalar_lea.vmem [#allocation6], %s2373_s18 }
  0x3c   : > { %2929 = dma.done.wait (%p3062_p7), %s394_s17, 256  }
  0x3d   : > { %2931 = vsyncadd (%p3062_p7), %s394_s17, 4294967040  ;;  %p466_p9 = scmp.lt.s32.totalorder %s2950_s30, 1  ;;  %p2385_p7 = scmp.ne.s32.totalorder %s2950_s30, 0 }
  0x3f   : > { %s467_s4 = scalar_select %p466_p9, %s2950_s30, 1 }
  0x40   : > { %496 = sbr.rel (%p2385_p7) target bundleno = 71 (0x47), region = 64 }
  0x41   : > { %s2434_s12 = sshll.u32 %s467_s4, 4  ;;  %s2437_s26 = sshll.u32 %s467_s4, 5 }
  0x42   : > { %s470_s15 = scalar_lea.vmem %s3501_s1, %s2434_s12  ;;  %s3134_s23 = scalar_lea.vmem %s3502_s2, %s2434_s12 }
  0x43   : > { %s480_s16 = scalar_lea.vmem %s3503_s3, %s2434_s12  ;;  %s3142_s19 = scalar_lea.vmem %s3506_s6, %s2437_s26 }
  0x44   : > { %s3147_s5 = scalar_lea.vmem %s3507_s7, %s2434_s12 }
  0x45   : > { %v497_v0 = vld [vmem:[%s3500_s0] sm:$0xff]  ;;  %vm499_vm0 = vcmask 261120   ;;  %v498_v1 = vld [vmem:[%s3500_s0 + $0x8] sm:$0xff] }
  0x46   : > { %500 = vst.msk [vmem:[#allocation2] sm:$0xff] %vm499_vm0, %v497_v0  ;;  %501 = vst.msk [vmem:[#allocation2 + $0x8] sm:$0xff] %vm499_vm0, %v498_v1 }
  0x47 PF: > { %v2768_v2 = vld [vmem:[%s470_s15 + $0x8] sm:$0xff]   ;;  %v2964_v3 = vmov 0.0   ;;  %v2769_v4 = vld [vmem:[%s470_s15] sm:$0xff]   ;;  %vm2965_vm1 = vmmov 0   ;;  %vm527_vm2 = vcmask 261120   ;;  %v511_v12 = vlaneseq  ;;  %s2966_s12 = smov 120  }
  0x48   : > { %2504 = vmatprep.subr.bf16.mxu1 %v2964_v3  ;;  %2520 = vmatprep.subr.bf16.mxu0 %v2964_v3  ;;  %v2772_v8 = vld [vmem:[%s480_s16 + $0x8] sm:$0xff]   ;;  %v2773_v10 = vld [vmem:[%s480_s16] sm:$0xff]   ;;  %vm703_vm3 = vcmask 64512   ;;  %s2967_s26 = smov 112   ;;  %vm764_vm4 = vcmask 1043456   ;;  %s2968_s15 = smov 104  }
  0x49   : > { %2505 = vmatpush3.bf16.msra.mxu1 %v2768_v2  ;;  %2508 = vmatprep.mubr.msk.bf16.mxu1 %vm2965_vm1, %v2964_v3  ;;  %v2770_v9 = vld [vmem:[%s3134_s23 + $0x8] sm:$0xff]   ;;  %v2771_v11 = vld [vmem:[%s3134_s23] sm:$0xff]   ;;  %v3185_v14 = vshrl.u32 %v511_v12, 7  ;;  %vm2098_vm5 = vcmask 523264   ;;  %p2427_p10 = scmp.ne.s32.totalorder %s2950_s30, 1 }
  0x4a   : > { %2506 = vmatprep.subr.bf16.mxu1 %v2964_v3  ;;  %2524 = vmatprep.mubr.msk.bf16.mxu0 %vm2965_vm1, %v2964_v3  ;;  %v3190_v20 = vld [vmem:[%s3147_s5] sm:$0xff] }
  0x4b   : > { %2521 = vmatpush3.bf16.msra.mxu0 %v2772_v8  ;;  %v513_v17 = vsub.s32 0, %v3185_v14  ;;  %v578_v18 = vsub.s32 1, %v3185_v14  ;;  %v639_v26 = vsub.s32 2, %v3185_v14 }
  0x4c   : > { %2522 = vmatprep.subr.bf16.mxu0 %v2964_v3 }
  0x4d   : > { %v3160_v5 = vld [vmem:[#allocation2] sm:$0xff]  ;;  %v3162_v6 = vld [vmem:[#allocation2 + $0x8] sm:$0xff]  ;;  %2507 = vmatpush3.bf16.msra.mxu1 %v2769_v4  ;;  %v514_v24 = vrot.slane %v3190_v20, %v513_v17  ;;  %v579_v25 = vrot.slane %v3190_v20, %v578_v18  ;;  %v640_v35 = vrot.slane %v3190_v20, %v639_v26 }
  0x4e   : > { %v506_v7 = vpack.c.bf16 %v3162_v6, %v3160_v5  ;;  %2512 = vmatprep.subr.bf16.mxu1 %v2964_v3 }
  0x4f   : > { %2523 = vmatpush3.bf16.msra.mxu0 %v2773_v10 }
  0x50   : > { %2509 = vmatmul.mubr.msk.bf16.vlgmr.msra.gmra.mxu1 %vm527_vm2, %v506_v7  ;;  %2534 = vmatprep.subr.bf16.mxu0 %v2964_v3 }
  0x51   : > { %2513 = vmatpush3.bf16.msra.mxu1 %v2770_v9  ;;  %2516 = vmatprep.mubr.msk.bf16.mxu1 %vm2965_vm1, %v2964_v3  ;;  %v699_v9 = vld [vmem:[%s3114_s20] sm:$0xf] }
  0x52   : > { %2514 = vmatprep.subr.bf16.mxu1 %v2964_v3  ;;  %2525 = vmatmul.mubr.msk.bf16.vlgmr.msra.gmra.mxu0 %vm527_vm2, %v506_v7 }
  0x53   : > { %2536 = vmatprep.mubr.msk.bf16.mxu0 %vm2965_vm1, %v2964_v3 }
  0x55   : > { %2515 = vmatpush3.bf16.msra.mxu1 %v2771_v11 }
  0x56   : > { %2528 = vmatprep.subr.bf16.mxu1 %v2964_v3 }
  0x58   : > { %2517 = vmatmul.mubr.msk.bf16.vlgmr.msra.gmra.mxu1 %vm527_vm2, %v506_v7 }
  0x59   : > { %2530 = vmatprep.mubr.msk.bf16.mxu1 %vm2965_vm1, %v2964_v3 }
 0x110   : > { %v565_v13 = vpop.f32.mrf.mxu1 }
 0x111   : > { %v566_v32 = vadd.f32 %v565_v13, %v514_v24  ;;  %v3244_v13 = vsel %vm764_vm4, %v699_v9, 0 }
 0x112   : > { %v2510_v15 = vpop.f32.mrf.mxu1  ;;  %v687_v19 = vpop.f32.mrf.mxu0 }
 0x113   : > { %v694_v39 = vmul.f32 0.35355338, %v566_v32  ;;  %v688_v40 = vadd.f32 %v687_v19, %v640_v35  ;;  %v700_v15 = vld [vmem:[%s3114_s20 + $0x4] sm:$0xf] }
 0x114   : > { %v568_v16 = vpop.f32.mrf.mxu1  ;;  %v2526_v22 = vpop.f32.mrf.mxu0 }
 0x115   : > { %v569_v29 = vadd.f32 %v568_v16, %v514_v24  ;;  %v3253_v16 = vsel %vm764_vm4, %v700_v15, 0 }
 0x116   : > { %v2511_v21 = vpop.f32.mrf.mxu1  ;;  %v690_v27 = vpop.f32.mrf.mxu0 }
 0x117   : > { %v695_v37 = vmul.f32 0.35355338, %v569_v29  ;;  %v691_v42 = vadd.f32 %v690_v27, %v640_v35 }
 0x118   : > { %v626_v23 = vpop.f32.mrf.mxu1  ;;  %v2527_v30 = vpop.f32.mrf.mxu0 }
 0x119   : > { %v627_v33 = vadd.f32 %v626_v23, %v579_v25  ;;  %v3206_v43 = vpack.c.bf16 %v695_v37, %v694_v39  ;;  %v3209_v44 = vpack.c.bf16 %v691_v42, %v688_v40 }
 0x11a   : > { %v2518_v28 = vpop.f32.mrf.mxu1 }
 0x11b   : > { %v766_v53 = vsel %vm764_vm4, %v3209_v44, 0 }
 0x11c   : > { %v629_v31 = vpop.f32.mrf.mxu1  ;;  %2535 = vmatpush3.bf16.msra.mxu0 %v766_v53 }
 0x11d   : > { %v630_v34 = vadd.f32 %v629_v31, %v579_v25  ;;  %2546 = vmatprep.subr.bf16.mxu0 %v2964_v3 }
 0x11e   : > { %v2519_v36 = vpop.f32.mrf.mxu1 }
 0x11f   : > { %v3200_v38 = vpack.c.bf16 %v630_v34, %v627_v33 }
 0x121   : > { %814 = vrot.lane.b32.xlu0 %v3200_v38, %s2966_s12  ;;  %v708_v41 = vsel %vm703_vm3, %v3200_v38, 0 }
 0x122   : > { %2529 = vmatpush3.bf16.xpose.msra.mxu1 %v708_v41 }
 0x123   : > { %2540 = vmatprep.subr.bf16.mxu1 %v2964_v3 }
 0x125   : > { %811 = vrot.lane.b32.xlu0 %v3206_v43, %s2966_s12 }
 0x129   : > { %874 = vrot.lane.b32.xlu0 %v3209_v44, %s2966_s12  ;;  %2531 = vmatmul.mubr.msk.bf16.vlgmr.msra.gmra.mxu1 %vm703_vm3, %v3206_v43 }
 0x12a   : > { %2542 = vmatprep.mubr.msk.bf16.mxu1 %vm2965_vm1, %v2964_v3 }
 0x12d   : > { %1018 = vrot.lane.b32.xlu0 %v3200_v38, %s2967_s26 }
 0x193   : > { %v815_v45 = vpop.permute.xlu0 %814 }
 0x194   : > { %v820_v46 = vsel %vm703_vm3, %v815_v45, 0 }
 0x195   : > { %2541 = vmatpush3.bf16.xpose.msra.mxu1 %v820_v46 }
 0x196   : > { %2552 = vmatprep.subr.bf16.mxu1 %v2964_v3 }
 0x197   : > { %v812_v47 = vpop.permute.xlu0 %811 }
 0x19b   : > { %v875_v63 = vpop.permute.xlu0 %874 }
 0x19c   : > { %2543 = vmatmul.mubr.msk.bf16.vlgmr.msra.gmra.mxu1 %vm703_vm3, %v812_v47  ;;  %v880_v0 = vsel %vm764_vm4, %v875_v63, 0 }
 0x19d   : > { %2554 = vmatprep.mubr.msk.bf16.mxu1 %vm2965_vm1, %v2964_v3  ;;  %2553 = vmatpush3.bf16.msra.mxu1 %v3253_v16 }
 0x19e   : > { %2564 = vmatprep.subr.bf16.mxu1 %v2964_v3 }
 0x19f   : > { %v1019_v19 = vpop.permute.xlu0 %1018 }
 0x1a0   : > { %v1024_v39 = vsel %vm703_vm3, %v1019_v19, 0 }
 0x1e9   : > { %v744_v48 = vpop.f32.mrf.mxu1 }
 0x1ea   : > { %v750_v49 = vsel %vm703_vm3, %v744_v48, -inf }
 0x1eb   : > { %751 = vmax.xlane.f32.xlu1 %v750_v49  ;;  %v2532_v50 = vpop.f32.mrf.mxu1 }
 0x1ed   : > { %v747_v51 = vpop.f32.mrf.mxu1 }
 0x1ef   : > { %v2533_v52 = vpop.f32.mrf.mxu1 }
 0x25c   : > { %v856_v54 = vpop.f32.mrf.mxu1 }
 0x25d   : > { %v862_v55 = vsel %vm703_vm3, %v856_v54, -inf }
 0x25e   : > { %863 = vmax.xlane.f32.xlu1 %v862_v55  ;;  %v2544_v56 = vpop.f32.mrf.mxu1 }
 0x260   : > { %v859_v57 = vpop.f32.mrf.mxu1 }
 0x262   : > { %v2545_v58 = vpop.f32.mrf.mxu1 }
 0x274   : > { %v752_v59 = vpop.xlane.xlu1 %751 }
 0x275   : > { %v753_v60 = vsub.f32 %v744_v48, %v752_v59 }
 0x277   : > { %v754_v61 = vmul.f32 1.442695, %v753_v60 }
 0x279   : > { %2780 = vpow2.f32 %v754_v61 }
 0x286   : > { %v2781_v62 = vpop.eup %2780 }
 0x287   : > { %v756_v1 = vsel %vm703_vm3, %v2781_v62, 0.0  ;;  %v760_v2 = vpack.c.bf16 %v2781_v62, %v2781_v62 }
 0x288   : > { %757 = vadd.xlane.f32.xlu0 %v756_v1 }
 0x289   : > { %2537 = vmatmul.mubr.msk.bf16.vlgmr.msra.gmra.mxu0 %vm703_vm3, %v760_v2  ;;  %v3291_v2 = vrot.slane %v3206_v43, 4 }
 0x28a   : > { %2547 = vmatpush3.bf16.msra.mxu0 %v880_v0  ;;  %2548 = vmatprep.mubr.msk.bf16.mxu0 %vm2965_vm1, %v2964_v3 }
 0x28b   : > { %2558 = vmatprep.subr.bf16.mxu0 %v2964_v3 }
 0x29e   : > { %1077 = vrot.lane.b32.xlu0 %v3209_v44, %s2967_s26 }
 0x2a2   : > { %1174 = vrot.lane.b32.xlu0 %v3206_v43, %s2968_s15 }
 0x2e7   : > { %v864_v4 = vpop.xlane.xlu1 %863 }
 0x2e8   : > { %v865_v7 = vsub.f32 %v856_v54, %v864_v4  ;;  %v701_v4 = vld [vmem:[%s3114_s20 + $0x8] sm:$0xf] }
 0x2ea   : > { %v866_v8 = vmul.f32 1.442695, %v865_v7  ;;  %v3297_v7 = vsel %vm764_vm4, %v701_v4, 0 }
 0x2ec   : > { %2782 = vpow2.f32 %v866_v8 }
 0x2f9   : > { %v2783_v10 = vpop.eup %2782 }
 0x2fa   : > { %v868_v11 = vsel %vm703_vm3, %v2783_v10, 0.0  ;;  %v872_v12 = vpack.c.bf16 %v2783_v10, %v2783_v10 }
 0x2fb   : > { %869 = vadd.xlane.f32.xlu1 %v868_v11 }
 0x2fc   : > { %2549 = vmatmul.mubr.msk.bf16.vlgmr.msra.gmra.mxu0 %vm703_vm3, %v872_v12 }
 0x2fd   : > { %2559 = vmatpush3.bf16.msra.mxu0 %v3244_v13  ;;  %2560 = vmatprep.mubr.msk.bf16.mxu0 %vm2965_vm1, %v2964_v3 }
 0x2fe   : > { %2570 = vmatprep.subr.bf16.mxu0 %v2964_v3 }
 0x30c   : > { %1016 = vrot.lane.b32.xlu1 %v3206_v43, %s2967_s26 }
 0x311   : > { %v758_v21 = vpop.xlane.xlu0 %757 }
 0x312   : > { %2784 = vrcp.f32 %v758_v21 }
 0x315   : > { %v1078_v25 = vpop.permute.xlu0 %1077 }
 0x316   : > { %v1083_v29 = vsel %vm764_vm4, %v1078_v25, 0 }
 0x319   : > { %v1175_v1 = vpop.permute.xlu0 %1174 }
 0x31f   : > { %v2785_v22 = vpop.eup %2784 }
 0x349   : > { %v802_v23 = vpop.f32.mrf.mxu0 }
 0x34a   : > { %v808_v24 = vmul.f32 %v2785_v22, %v802_v23 }
 0x34b   : > { %v2538_v26 = vpop.f32.mrf.mxu0 }
 0x34c   : > { %v809_v27 = vpack.c.bf16 %v808_v24, %v808_v24 }
 0x34d   : > { %v805_v28 = vpop.f32.mrf.mxu0 }
 0x34e   : > { %2561 = vmatmul.mubr.msk.bf16.vlgmr.msra.gmra.mxu0 %vm703_vm3, %v809_v27  ;;  %v3308_v28 = vrot.slane %v3200_v38, 4 }
 0x34f   : > { %2571 = vmatpush3.bf16.msra.mxu0 %v1083_v29  ;;  %v2539_v30 = vpop.f32.mrf.mxu0  ;;  %2572 = vmatprep.mubr.msk.bf16.mxu0 %vm2965_vm1, %v2964_v3 }
 0x350   : > { %2582 = vmatprep.subr.bf16.mxu0 %v2964_v3 }
 0x384   : > { %v870_v31 = vpop.xlane.xlu1 %869 }
 0x385   : > { %2786 = vrcp.f32 %v870_v31 }
 0x388   : > { %v1017_v41 = vpop.permute.xlu1 %1016 }
 0x392   : > { %v2787_v32 = vpop.eup %2786 }
 0x3bc   : > { %v916_v33 = vpop.f32.mrf.mxu0 }
 0x3bd   : > { %v922_v34 = vmul.f32 %v2787_v32, %v916_v33 }
 0x3be   : > { %v2550_v35 = vpop.f32.mrf.mxu0 }
 0x3bf   : > { %v923_v36 = vpack.c.bf16 %v922_v34, %v922_v34  ;;  %v1338_v35 = vsel %vm703_vm3, %v3308_v28, 0 }
 0x3c0   : > { %v919_v37 = vpop.f32.mrf.mxu0 }
 0x3c1   : > { %2555 = vmatmul.mubr.msk.bf16.vlgmr.msra.gmra.mxu1 %vm703_vm3, %v923_v36 }
 0x3c2   : > { %2565 = vmatpush3.bf16.xpose.msra.mxu1 %v1024_v39  ;;  %v2551_v40 = vpop.f32.mrf.mxu0  ;;  %2566 = vmatprep.mubr.msk.bf16.mxu1 %vm2965_vm1, %v2964_v3 }
 0x3c3   : > { %2576 = vmatprep.subr.bf16.mxu1 %v2964_v3 }
 0x3c9   : > { %2567 = vmatmul.mubr.msk.bf16.vlgmr.msra.gmra.mxu1 %vm703_vm3, %v1017_v41 }
 0x3ca   : > { %2578 = vmatprep.mubr.msk.bf16.mxu1 %vm2965_vm1, %v2964_v3  ;;  %2577 = vmatpush3.bf16.msra.mxu1 %v3297_v7 }
 0x3cb   : > { %2588 = vmatprep.subr.bf16.mxu1 %v2964_v3 }
 0x40e   : > { %v3272_v42 = vpop.f32.mrf.mxu0 }
 0x410   : > { %v2562_v45 = vpop.f32.mrf.mxu0 }
 0x412   : > { %v1013_v46 = vpop.f32.mrf.mxu0 }
 0x414   : > { %v2563_v47 = vpop.f32.mrf.mxu0 }
 0x481   : > { %v3274_v48 = vpop.f32.mrf.mxu1 }
 0x482   : > { %v1011_v39 = vadd.f32 %v3272_v42, %v3274_v48  ;;  %v3341_v42 = vrot.slane %v3209_v44, 4 }
 0x483   : > { %v2556_v49 = vpop.f32.mrf.mxu1 }
 0x484   : > { %v702_v49 = vld [vmem:[%s3114_s20 + $0xc] sm:$0xf] }
 0x485   : > { %v967_v50 = vpop.f32.mrf.mxu1 }
 0x486   : > { %v3336_v50 = vsel %vm764_vm4, %v702_v49, 0 }
 0x487   : > { %v2557_v51 = vpop.f32.mrf.mxu1 }
 0x489   : > { %v1060_v52 = vpop.f32.mrf.mxu1 }
 0x48a   : > { %v1066_v53 = vsel %vm703_vm3, %v1060_v52, -inf }
 0x48b   : > { %1067 = vmax.xlane.f32.xlu1 %v1066_v53  ;;  %v2568_v54 = vpop.f32.mrf.mxu1 }
 0x48d   : > { %v1063_v55 = vpop.f32.mrf.mxu1 }
 0x48f   : > { %v2569_v56 = vpop.f32.mrf.mxu1 }
 0x490   : > { %v1396_v56 = vsel %vm764_vm4, %v3341_v42, 0 }
 0x49c   : > { %1176 = vrot.lane.b32.xlu1 %v3200_v38, %s2968_s15 }
 0x514   : > { %v1068_v57 = vpop.xlane.xlu1 %1067 }
 0x515   : > { %v1069_v58 = vsub.f32 %v1060_v52, %v1068_v57 }
 0x517   : > { %v1070_v59 = vmul.f32 1.442695, %v1069_v58 }
 0x518   : > { %v1177_v61 = vpop.permute.xlu1 %1176 }
 0x519   : > { %2788 = vpow2.f32 %v1070_v59  ;;  %v1182_v0 = vsel %vm703_vm3, %v1177_v61, 0 }
 0x526   : > { %v2789_v60 = vpop.eup %2788 }
 0x527   : > { %v1072_v62 = vsel %vm703_vm3, %v2789_v60, 0.0  ;;  %v1076_v63 = vpack.c.bf16 %v2789_v60, %v2789_v60 }
 0x528   : > { %1073 = vadd.xlane.f32.xlu0 %v1072_v62 }
 0x529   : > { %2573 = vmatmul.mubr.msk.bf16.vlgmr.msra.gmra.mxu0 %vm703_vm3, %v1076_v63 }
 0x52a   : > { %2583 = vmatpush3.bf16.xpose.msra.mxu0 %v1182_v0  ;;  %2584 = vmatprep.mubr.msk.bf16.mxu0 %vm2965_vm1, %v2964_v3 }
 0x52b   : > { %2594 = vmatprep.subr.bf16.mxu0 %v2964_v3 }
 0x531   : > { %2585 = vmatmul.mubr.msk.bf16.vlgmr.msra.gmra.mxu0 %vm703_vm3, %v1175_v1 }
 0x532   : > { %2596 = vmatprep.mubr.msk.bf16.mxu0 %vm2965_vm1, %v2964_v3  ;;  %2595 = vmatpush3.bf16.msra.mxu0 %v3336_v50 }
 0x533   : > { %2606 = vmatprep.subr.bf16.mxu0 %v2964_v3 }
 0x53e   : > { %1235 = vrot.lane.b32.xlu0 %v3209_v44, %s2968_s15 }
 0x542   : > { %1440 = vrot.lane.b32.xlu0 %v3291_v2, %s2966_s12 }
 0x5b1   : > { %v1074_v8 = vpop.xlane.xlu0 %1073 }
 0x5b2   : > { %2790 = vrcp.f32 %v1074_v8 }
 0x5b5   : > { %v1236_v12 = vpop.permute.xlu0 %1235 }
 0x5b6   : > { %v1241_v21 = vsel %vm764_vm4, %v1236_v12, 0 }
 0x5b9   : > { %v1441_v37 = vpop.permute.xlu0 %1440 }
 0x5bf   : > { %v2791_v9 = vpop.eup %2790 }
 0x5e9   : > { %v1119_v10 = vpop.f32.mrf.mxu0 }
 0x5ea   : > { %v1125_v11 = vmul.f32 %v2791_v9, %v1119_v10 }
 0x5eb   : > { %v2574_v15 = vpop.f32.mrf.mxu0 }
 0x5ec   : > { %v1126_v43 = vpack.c.bf16 %v1125_v11, %v1125_v11 }
 0x5ed   : > { %v1122_v19 = vpop.f32.mrf.mxu0 }
 0x5ee   : > { %2579 = vmatmul.mubr.msk.bf16.vlgmr.msra.gmra.mxu1 %vm703_vm3, %v1126_v43 }
 0x5ef   : > { %2589 = vmatpush3.bf16.msra.mxu1 %v1241_v21  ;;  %v2575_v22 = vpop.f32.mrf.mxu0  ;;  %2590 = vmatprep.mubr.msk.bf16.mxu1 %vm2965_vm1, %v2964_v3 }
 0x5f0   : > { %2600 = vmatprep.subr.bf16.mxu1 %v2964_v3 }
 0x5f1   : > { %v1218_v23 = vpop.f32.mrf.mxu0 }
 0x5f2   : > { %v1224_v24 = vsel %vm703_vm3, %v1218_v23, -inf }
 0x5f3   : > { %1225 = vmax.xlane.f32.xlu1 %v1224_v24  ;;  %v2586_v25 = vpop.f32.mrf.mxu0 }
 0x5f5   : > { %v1221_v26 = vpop.f32.mrf.mxu0 }
 0x5f7   : > { %v2587_v27 = vpop.f32.mrf.mxu0 }
 0x604   : > { %1442 = vrot.lane.b32.xlu1 %v3308_v28, %s2966_s12 }
 0x67c   : > { %v1226_v29 = vpop.xlane.xlu1 %1225 }
 0x67d   : > { %v1227_v30 = vsub.f32 %v1218_v23, %v1226_v29 }
 0x67f   : > { %v1228_v31 = vmul.f32 1.442695, %v1227_v30 }
 0x680   : > { %v1443_v38 = vpop.permute.xlu1 %1442 }
 0x681   : > { %2792 = vpow2.f32 %v1228_v31  ;;  %v1448_v36 = vsel %vm703_vm3, %v1443_v38, 0 }
 0x68e   : > { %v2793_v32 = vpop.eup %2792 }
 0x68f   : > { %v1230_v33 = vsel %vm703_vm3, %v2793_v32, 0.0  ;;  %v1234_v34 = vpack.c.bf16 %v2793_v32, %v2793_v32 }
 0x690   : > { %1231 = vadd.xlane.f32.xlu0 %v1230_v33 }
 0x691   : > { %2591 = vmatmul.mubr.msk.bf16.vlgmr.msra.gmra.mxu1 %vm703_vm3, %v1234_v34 }
 0x692   : > { %2601 = vmatpush3.bf16.xpose.msra.mxu1 %v1338_v35  ;;  %2602 = vmatprep.mubr.msk.bf16.mxu1 %vm2965_vm1, %v2964_v3 }
 0x693   : > { %2612 = vmatprep.subr.bf16.mxu1 %v2964_v3 }
 0x699   : > { %2603 = vmatmul.mubr.msk.bf16.vlgmr.msra.gmra.mxu1 %vm703_vm3, %v3291_v2 }
 0x69a   : > { %2613 = vmatpush3.bf16.xpose.msra.mxu1 %v1448_v36  ;;  %2614 = vmatprep.mubr.msk.bf16.mxu1 %vm2965_vm1, %v2964_v3 }
 0x69b   : > { %2624 = vmatprep.subr.bf16.mxu1 %v2964_v3 }
 0x6a1   : > { %2615 = vmatmul.mubr.msk.bf16.vlgmr.msra.gmra.mxu1 %vm703_vm3, %v1441_v37 }
 0x6a2   : > { %2625 = vmatpush3.bf16.msra.mxu1 %v3253_v16  ;;  %2626 = vmatprep.mubr.msk.bf16.mxu1 %vm2965_vm1, %v2964_v3 }
 0x6a3   : > { %2636 = vmatprep.subr.bf16.mxu1 %v2964_v3 }
 0x6ae   : > { %v1167_v40 = vpop.f32.mrf.mxu1 }
 0x6af   : > { %v3332_v41 = vadd.f32 %v1167_v40, %v1011_v39 }
 0x6b0   : > { %v2580_v45 = vpop.f32.mrf.mxu1 }
 0x6b2   : > { %v1170_v46 = vpop.f32.mrf.mxu1 }
 0x6b4   : > { %v2581_v47 = vpop.f32.mrf.mxu1 }
 0x719   : > { %v1232_v16 = vpop.xlane.xlu0 %1231 }
 0x71a   : > { %2794 = vrcp.f32 %v1232_v16 }
 0x727   : > { %v2795_v51 = vpop.eup %2794 }
 0x751   : > { %v1277_v52 = vpop.f32.mrf.mxu1 }
 0x752   : > { %v1283_v53 = vmul.f32 %v2795_v51, %v1277_v52 }
 0x753   : > { %v2592_v48 = vpop.f32.mrf.mxu1 }
 0x754   : > { %v1284_v54 = vpack.c.bf16 %v1283_v53, %v1283_v53 }
 0x755   : > { %v1280_v55 = vpop.f32.mrf.mxu1 }
 0x756   : > { %2597 = vmatmul.mubr.msk.bf16.vlgmr.msra.gmra.mxu0 %vm703_vm3, %v1284_v54 }
 0x757   : > { %2607 = vmatpush3.bf16.msra.mxu0 %v1396_v56  ;;  %v2593_v57 = vpop.f32.mrf.mxu1  ;;  %2608 = vmatprep.mubr.msk.bf16.mxu0 %vm2965_vm1, %v2964_v3 }
 0x758   : > { %2618 = vmatprep.subr.bf16.mxu0 %v2964_v3 }
 0x759   : > { %v1374_v58 = vpop.f32.mrf.mxu1 }
 0x75a   : > { %v1380_v59 = vsel %vm703_vm3, %v1374_v58, -inf }
 0x75b   : > { %1381 = vmax.xlane.f32.xlu1 %v1380_v59  ;;  %v2604_v44 = vpop.f32.mrf.mxu1 }
 0x75d   : > { %v1377_v60 = vpop.f32.mrf.mxu1 }
 0x75f   : > { %v2605_v61 = vpop.f32.mrf.mxu1 }
 0x761   : > { %v1484_v62 = vpop.f32.mrf.mxu1 }
 0x762   : > { %v1490_v63 = vsel %vm703_vm3, %v1484_v62, -inf }
 0x763   : > { %1491 = vmax.xlane.f32.xlu0 %v1490_v63  ;;  %v2616_v0 = vpop.f32.mrf.mxu1 }
 0x765   : > { %v1487_v1 = vpop.f32.mrf.mxu1 }
 0x767   : > { %v2617_v4 = vpop.f32.mrf.mxu1 }
 0x779   : > { %1501 = vrot.lane.b32.xlu0 %v3341_v42, %s2966_s12 }
 0x77d   : > { %1637 = vrot.lane.b32.xlu0 %v3291_v2, %s2967_s26 }
 0x7e4   : > { %v1382_v8 = vpop.xlane.xlu1 %1381 }
 0x7e5   : > { %v1383_v9 = vsub.f32 %v1374_v58, %v1382_v8 }
 0x7e7   : > { %v1384_v10 = vmul.f32 1.442695, %v1383_v9 }
 0x7e9   : > { %2796 = vpow2.f32 %v1384_v10 }
 0x7ec   : > { %v1492_v11 = vpop.xlane.xlu0 %1491 }
 0x7ed   : > { %v1493_v12 = vsub.f32 %v1484_v62, %v1492_v11 }
 0x7ef   : > { %v1494_v15 = vmul.f32 1.442695, %v1493_v12 }
 0x7f0   : > { %v1502_v19 = vpop.permute.xlu0 %1501 }
 0x7f1   : > { %2798 = vpow2.f32 %v1494_v15  ;;  %v1507_v23 = vsel %vm764_vm4, %v1502_v19, 0 }
 0x7f4   : > { %v1638_v32 = vpop.permute.xlu0 %1637 }
 0x7f6   : > { %v2797_v43 = vpop.eup %2796 }
 0x7f7   : > { %v1386_v21 = vsel %vm703_vm3, %v2797_v43, 0.0  ;;  %v1390_v22 = vpack.c.bf16 %v2797_v43, %v2797_v43 }
 0x7f8   : > { %1387 = vadd.xlane.f32.xlu0 %v1386_v21 }
 0x7f9   : > { %2609 = vmatmul.mubr.msk.bf16.vlgmr.msra.gmra.mxu0 %vm703_vm3, %v1390_v22 }
 0x7fa   : > { %2619 = vmatpush3.bf16.msra.mxu0 %v1507_v23  ;;  %2620 = vmatprep.mubr.msk.bf16.mxu0 %vm2965_vm1, %v2964_v3 }
 0x7fb   : > { %2630 = vmatprep.subr.bf16.mxu0 %v2964_v3 }
 0x7fe   : > { %v2799_v24 = vpop.eup %2798 }
 0x7ff   : > { %v1496_v25 = vsel %vm703_vm3, %v2799_v24, 0.0  ;;  %v1500_v26 = vpack.c.bf16 %v2799_v24, %v2799_v24 }
 0x800   : > { %1497 = vadd.xlane.f32.xlu1 %v1496_v25 }
 0x801   : > { %2621 = vmatmul.mubr.msk.bf16.vlgmr.msra.gmra.mxu0 %vm703_vm3, %v1500_v26 }
 0x802   : > { %2631 = vmatpush3.bf16.msra.mxu0 %v3244_v13  ;;  %2632 = vmatprep.mubr.msk.bf16.mxu0 %vm2965_vm1, %v2964_v3 }
 0x803   : > { %2642 = vmatprep.subr.bf16.mxu0 %v2964_v3 }
 0x80e   : > { %1698 = vrot.lane.b32.xlu0 %v3341_v42, %s2967_s26 }
 0x811   : > { %1639 = vrot.lane.b32.xlu1 %v3308_v28, %s2967_s26 }
 0x812   : > { %1792 = vrot.lane.b32.xlu0 %v3291_v2, %s2968_s15 }
 0x816   : > { %v1325_v27 = vpop.f32.mrf.mxu0 }
 0x817   : > { %v3374_v29 = vadd.f32 %v1325_v27, %v3332_v41 }
 0x818   : > { %v2598_v30 = vpop.f32.mrf.mxu0 }
 0x81a   : > { %v1328_v13 = vpop.f32.mrf.mxu0 }
 0x81c   : > { %v2599_v31 = vpop.f32.mrf.mxu0 }
 0x881   : > { %v1388_v33 = vpop.xlane.xlu0 %1387 }
 0x882   : > { %2800 = vrcp.f32 %v1388_v33 }
 0x885   : > { %v1699_v37 = vpop.permute.xlu0 %1698 }
 0x886   : > { %v1704_v2 = vsel %vm764_vm4, %v1699_v37, 0 }
 0x889   : > { %v1498_v34 = vpop.xlane.xlu1 %1497 }
 0x88a   : > { %2802 = vrcp.f32 %v1498_v34 }
 0x88d   : > { %v1640_v16 = vpop.permute.xlu1 %1639 }
 0x88e   : > { %v1645_v48 = vsel %vm703_vm3, %v1640_v16, 0 }
 0x88f   : > { %v2801_v35 = vpop.eup %2800 }
 0x897   : > { %v2803_v46 = vpop.eup %2802 }
 0x8b9   : > { %v1432_v38 = vpop.f32.mrf.mxu0 }
 0x8ba   : > { %v1438_v36 = vmul.f32 %v2801_v35, %v1432_v38 }
 0x8bb   : > { %v2610_v39 = vpop.f32.mrf.mxu0 }
 0x8bc   : > { %v1439_v40 = vpack.c.bf16 %v1438_v36, %v1438_v36  ;;  %v1949_v39 = vsub.s32 3, %v3185_v14 }
 0x8bd   : > { %v1435_v45 = vpop.f32.mrf.mxu0 }
 0x8be   : > { %2633 = vmatmul.mubr.msk.bf16.vlgmr.msra.gmra.mxu0 %vm703_vm3, %v1439_v40  ;;  %v1950_v40 = vrot.slane %v3190_v20, %v1949_v39 }
 0x8bf   : > { %2643 = vmatpush3.bf16.msra.mxu0 %v1704_v2  ;;  %v2611_v41 = vpop.f32.mrf.mxu0  ;;  %2644 = vmatprep.mubr.msk.bf16.mxu0 %vm2965_vm1, %v2964_v3 }
 0x8c0   : > { %2654 = vmatprep.subr.bf16.mxu0 %v2964_v3  ;;  %v1951_v45 = vadd.f32 %v1950_v40, %v3374_v29 }
 0x8c1   : > { %v1543_v47 = vpop.f32.mrf.mxu0 }
 0x8c2   : > { %v1549_v49 = vmul.f32 %v2803_v46, %v1543_v47  ;;  %v1953_v46 = vadd.f32 %v1951_v45, %v3160_v5  ;;  %v2777_v45 = vld [vmem:[%s3142_s19 + $0x10] sm:$0xff]  }
 0x8c3   : > { %v2622_v51 = vpop.f32.mrf.mxu0 }
 0x8c4   : > { %v1550_v52 = vpack.c.bf16 %v1549_v49, %v1549_v49  ;;  %v1955_v47 = vsel %vm527_vm2, %v1953_v46, 0.0 }
 0x8c5   : > { %v1546_v53 = vpop.f32.mrf.mxu0 }
 0x8c6   : > { %2627 = vmatmul.mubr.msk.bf16.vlgmr.msra.gmra.mxu1 %vm703_vm3, %v1550_v52 }
 0x8c7   : > { %2637 = vmatpush3.bf16.xpose.msra.mxu1 %v1645_v48  ;;  %v2623_v54 = vpop.f32.mrf.mxu0  ;;  %2638 = vmatprep.mubr.msk.bf16.mxu1 %vm2965_vm1, %v2964_v3 }
 0x8c8   : > { %2648 = vmatprep.subr.bf16.mxu1 %v2964_v3 }
 0x8ce   : > { %2639 = vmatmul.mubr.msk.bf16.vlgmr.msra.gmra.mxu1 %vm703_vm3, %v1638_v32 }
 0x8cf   : > { %2649 = vmatpush3.bf16.msra.mxu1 %v3297_v7  ;;  %2650 = vmatprep.mubr.msk.bf16.mxu1 %vm2965_vm1, %v2964_v3 }
 0x8d0   : > { %2660 = vmatprep.subr.bf16.mxu1 %v2964_v3 }
 0x97e   : > { %v1631_v55 = vpop.f32.mrf.mxu0 }
 0x980   : > { %v2634_v56 = vpop.f32.mrf.mxu0 }
 0x982   : > { %v1634_v57 = vpop.f32.mrf.mxu0 }
 0x984   : > { %v2635_v58 = vpop.f32.mrf.mxu0 }
 0x986   : > { %v1588_v59 = vpop.f32.mrf.mxu1 }
 0x987   : > { %v3391_v44 = vadd.f32 %v1631_v55, %v1588_v59 }
 0x988   : > { %v2628_v60 = vpop.f32.mrf.mxu1 }
 0x98a   : > { %v1591_v61 = vpop.f32.mrf.mxu1 }
 0x98c   : > { %v2629_v62 = vpop.f32.mrf.mxu1 }
 0x98e   : > { %v1681_v63 = vpop.f32.mrf.mxu1 }
 0x98f   : > { %v1687_v0 = vsel %vm703_vm3, %v1681_v63, -inf }
 0x990   : > { %1688 = vmax.xlane.f32.xlu1 %v1687_v0  ;;  %v2640_v7 = vpop.f32.mrf.mxu1 }
 0x992   : > { %v1684_v1 = vpop.f32.mrf.mxu1 }
 0x994   : > { %v2641_v4 = vpop.f32.mrf.mxu1 }
 0x9a1   : > { %1794 = vrot.lane.b32.xlu1 %v3308_v28, %s2968_s15  ;;  %v1793_v28 = vpop.permute.xlu0 %1792 }
 0xa19   : > { %v1689_v8 = vpop.xlane.xlu1 %1688 }
 0xa1a   : > { %v1690_v9 = vsub.f32 %v1681_v63, %v1689_v8 }
 0xa1c   : > { %v1691_v10 = vmul.f32 1.442695, %v1690_v9 }
 0xa1d   : > { %v1795_v12 = vpop.permute.xlu1 %1794 }
 0xa1e   : > { %2804 = vpow2.f32 %v1691_v10  ;;  %v1800_v19 = vsel %vm703_vm3, %v1795_v12, 0 }
 0xa2b   : > { %v2805_v11 = vpop.eup %2804 }
 0xa2c   : > { %v1693_v15 = vsel %vm703_vm3, %v2805_v11, 0.0  ;;  %v1697_v43 = vpack.c.bf16 %v2805_v11, %v2805_v11 }
 0xa2d   : > { %1694 = vadd.xlane.f32.xlu1 %v1693_v15 }
 0xa2e   : > { %2645 = vmatmul.mubr.msk.bf16.vlgmr.msra.gmra.mxu0 %vm703_vm3, %v1697_v43 }
 0xa2f   : > { %2655 = vmatpush3.bf16.xpose.msra.mxu0 %v1800_v19  ;;  %2656 = vmatprep.mubr.msk.bf16.mxu0 %vm2965_vm1, %v2964_v3 }
 0xa30   : > { %2666 = vmatprep.subr.bf16.mxu0 %v2964_v3 }
 0xa36   : > { %2657 = vmatmul.mubr.msk.bf16.vlgmr.msra.gmra.mxu0 %vm703_vm3, %v1793_v28  ;;  %v2774_v28 = vld [vmem:[%s3120_s13 + $0x8] sm:$0xff]  }
 0xa37   : > { %2667 = vmatpush3.bf16.msra.mxu0 %v3336_v50  ;;  %2668 = vmatprep.mubr.msk.bf16.mxu0 %vm2965_vm1, %v2964_v3 }
 0xa38   : > { %2680 = vmatprep.subr.bf16.mxu0 %v2964_v3 }
 0xab6   : > { %v1695_v21 = vpop.xlane.xlu1 %1694 }
 0xab7   : > { %2806 = vrcp.f32 %v1695_v21  ;;  %v2775_v21 = vld [vmem:[%s3120_s13] sm:$0xff]  }
 0xac4   : > { %v2807_v22 = vpop.eup %2806 }
 0xaee   : > { %v1740_v23 = vpop.f32.mrf.mxu0 }
 0xaef   : > { %v1746_v24 = vmul.f32 %v2807_v22, %v1740_v23 }
 0xaf0   : > { %v2646_v25 = vpop.f32.mrf.mxu0 }
 0xaf1   : > { %v1747_v26 = vpack.c.bf16 %v1746_v24, %v1746_v24 }
 0xaf2   : > { %v1743_v27 = vpop.f32.mrf.mxu0 }
 0xaf3   : > { %2651 = vmatmul.mubr.msk.bf16.vlgmr.msra.gmra.mxu1 %vm703_vm3, %v1747_v26 }
 0xaf4   : > { %v2647_v30 = vpop.f32.mrf.mxu0  ;;  %2662 = vmatprep.mubr.msk.bf16.mxu1 %vm2965_vm1, %v2964_v3 }
 0xaf5   : > { %v1984_v30 = vsub.s32 4, %v3185_v14 }
 0xaf6   : > { %v1836_v50 = vpop.f32.mrf.mxu0 }
 0xaf7   : > { %v1842_v13 = vsel %vm703_vm3, %v1836_v50, -inf }
 0xaf8   : > { %1843 = vmax.xlane.f32.xlu0 %v1842_v13  ;;  %v2658_v31 = vpop.f32.mrf.mxu0 }
 0xaf9   : > { %v1985_v31 = vrot.slane %v3190_v20, %v1984_v30 }
 0xafa   : > { %v1839_v32 = vpop.f32.mrf.mxu0 }
 0xafb   : > { %v1990_v32 = vsub.s32 5, %v3185_v14 }
 0xafc   : > { %v2659_v33 = vpop.f32.mrf.mxu0 }
 0xb0e   : > { %1853 = vrot.lane.b32.xlu0 %v3341_v42, %s2968_s15 }
 0xb81   : > { %v1844_v34 = vpop.xlane.xlu0 %1843 }
 0xb82   : > { %v1845_v35 = vsub.f32 %v1836_v50, %v1844_v34 }
 0xb84   : > { %v1846_v38 = vmul.f32 1.442695, %v1845_v35 }
 0xb85   : > { %v1854_v36 = vpop.permute.xlu0 %1853 }
 0xb86   : > { %2808 = vpow2.f32 %v1846_v38  ;;  %v1859_v37 = vsel %vm764_vm4, %v1854_v36, 0  ;;  %v1991_v38 = vrot.slane %v3190_v20, %v1990_v32 }
 0xb87   : > { %2661 = vmatpush3.bf16.msra.mxu1 %v1859_v37 }
 0xb88   : > { %2672 = vmatprep.subr.bf16.mxu1 %v2964_v3 }
 0xb93   : > { %v2809_v2 = vpop.eup %2808 }
 0xb94   : > { %v1848_v41 = vsel %vm703_vm3, %v2809_v2, 0.0  ;;  %v1852_v42 = vpack.c.bf16 %v2809_v2, %v2809_v2  ;;  %v2778_v2 = vld [vmem:[%s3142_s19 + $0x8] sm:$0xff]  }
 0xb95   : > { %1849 = vadd.xlane.f32.xlu1 %v1848_v41  ;;  %v2779_v41 = vld [vmem:[%s3142_s19] sm:$0xff]  }
 0xb96   : > { %2663 = vmatmul.mubr.msk.bf16.vlgmr.msra.gmra.mxu1 %vm703_vm3, %v1852_v42  ;;  %v2001_v42 = vsub.s32 6, %v3185_v14 }
 0xb97   : > { %2676 = vmatprep.mubr.msk.bf16.mxu1 %vm2965_vm1, %v2964_v3  ;;  %2673 = vmatpush3.bf16.msra.mxu1 %v2774_v28 }
 0xb98   : > { %2674 = vmatprep.subr.bf16.mxu1 %v2964_v3 }
 0xb99   : > { %1956 = vadd.xlane.f32.xlu1 %v1955_v47 }
 0xb9b   : > { %2675 = vmatpush3.bf16.msra.mxu1 %v2775_v21 }
 0xbb3   : > { %v1785_v49 = vpop.f32.mrf.mxu1 }
 0xbb4   : > { %v1791_v16 = vadd.f32 %v1785_v49, %v3391_v44 }
 0xbb5   : > { %v2652_v51 = vpop.f32.mrf.mxu1 }
 0xbb7   : > { %v1788_v29 = vpop.f32.mrf.mxu1 }
 0xbb9   : > { %v2653_v52 = vpop.f32.mrf.mxu1 }
 0xc1e   : > { %v1850_v53 = vpop.xlane.xlu1 %1849 }
 0xc1f   : > { %2810 = vrcp.f32 %v1850_v53 }
 0xc22   : > { %v1957_v59 = vpop.xlane.xlu1 %1956 }
 0xc23   : > { %v1962_v60 = vmul.f32 0.03125, %v1957_v59 }
 0xc25   : > { %v1964_v63 = vsub.f32 %v1953_v46, %v1962_v60  ;;  %v2002_v46 = vrot.slane %v3190_v20, %v2001_v42 }
 0xc27   : > { %v1966_v9 = vmul.f32 %v1964_v63, %v1964_v63 }
 0xc29   : > { %v1968_v10 = vsel %vm527_vm2, %v1966_v9, 0.0 }
 0xc2c   : > { %v2811_v48 = vpop.eup %2810 }
 0xc56   : > { %v1895_v54 = vpop.f32.mrf.mxu1 }
 0xc57   : > { %v1901_v5 = vmul.f32 %v2811_v48, %v1895_v54 }
 0xc58   : > { %v2664_v55 = vpop.f32.mrf.mxu1 }
 0xc59   : > { %v1902_v56 = vpack.c.bf16 %v1901_v5, %v1901_v5  ;;  %v2072_v5 = vsub.s32 7, %v3185_v14 }
 0xc5a   : > { %v1898_v57 = vpop.f32.mrf.mxu1 }
 0xc5b   : > { %2669 = vmatmul.mubr.msk.bf16.vlgmr.msra.gmra.mxu0 %vm703_vm3, %v1902_v56 }
 0xc5c   : > { %v2665_v58 = vpop.f32.mrf.mxu1  ;;  %2688 = vmatprep.mubr.msk.bf16.mxu0 %vm2965_vm1, %v2964_v3 }
 0xd1b   : > { %v1940_v44 = vpop.f32.mrf.mxu0 }
 0xd1c   : > { %v1946_v61 = vadd.f32 %v1940_v44, %v1791_v16 }
 0xd1d   : > { %v2670_v62 = vpop.f32.mrf.mxu0 }
 0xd1e   : > { %v1952_v0 = vadd.f32 %v1950_v40, %v1946_v61 }
 0xd1f   : > { %v1943_v7 = vpop.f32.mrf.mxu0 }
 0xd20   : > { %v1954_v1 = vadd.f32 %v1952_v0, %v3162_v6  ;;  %v2776_v6 = vld [vmem:[%s3142_s19 + $0x18] sm:$0xff]  }
 0xd21   : > { %v2671_v4 = vpop.f32.mrf.mxu0  ;;  %2681 = vmatpush3.bf16.msra.mxu0 %v2776_v6 }
 0xd22   : > { %v1958_v8 = vsel %vm527_vm2, %v1954_v1, 0.0  ;;  %2682 = vmatprep.subr.bf16.mxu0 %v2964_v3 }
 0xd23   : > { %1959 = vadd.xlane.f32.xlu1 %v1958_v8 }
 0xd25   : > { %2683 = vmatpush3.bf16.msra.mxu0 %v2777_v45 }
 0xd26   : > { %2684 = vmatprep.subr.bf16.mxu0 %v2964_v3 }
 0xd27   : > { %1969 = vadd.xlane.f32.xlu1 %v1968_v10 }
 0xd29   : > { %2685 = vmatpush3.bf16.msra.mxu0 %v2778_v2 }
 0xd2a   : > { %2686 = vmatprep.subr.bf16.mxu0 %v2964_v3  ;;  %v2073_v3 = vrot.slane %v3190_v20, %v2072_v5 }
 0xd2d   : > { %2687 = vmatpush3.bf16.msra.mxu0 %v2779_v41 }
 0xdac   : > { %v1960_v11 = vpop.xlane.xlu1 %1959 }
 0xdad   : > { %v1963_v12 = vmul.f32 0.03125, %v1960_v11 }
 0xdaf   : > { %v1965_v15 = vsub.f32 %v1954_v1, %v1963_v12 }
 0xdb0   : > { %v1970_v22 = vpop.xlane.xlu1 %1969 }
 0xdb1   : > { %v1967_v43 = vmul.f32 %v1965_v15, %v1965_v15  ;;  %v1974_v23 = vmul.f32 0.03125, %v1970_v22  ;;  %v505_v22 = vld [vmem:[%s3147_s5 + $0x8] sm:$0x3] }
 0xdb3   : > { %v1971_v19 = vsel %vm527_vm2, %v1967_v43, 0.0  ;;  %v1976_v24 = vadd.f32 1e-05, %v1974_v23  ;;  %v2174_v23 = vrot.slane %v505_v22, %v513_v17 }
 0xdb4   : > { %1972 = vadd.xlane.f32.xlu1 %v1971_v19 }
 0xdb5   : > { %2812 = vrsqrt.f32 %v1976_v24 }
 0xdc2   : > { %v2813_v50 = vpop.eup %2812 }
 0xdc3   : > { %v1980_v13 = vmul.f32 %v2813_v50, %v1964_v63 }
 0xdc5   : > { %v1986_v35 = vmul.f32 %v1985_v31, %v1980_v13 }
 0xdc7   : > { %v1992_v37 = vadd.f32 %v1991_v38, %v1986_v35 }
 0xe3d   : > { %v1973_v25 = vpop.xlane.xlu1 %1972 }
 0xe3e   : > { %v1975_v26 = vmul.f32 0.03125, %v1973_v25  ;;  %v2180_v25 = vrot.slane %v505_v22, %v578_v18 }
 0xe40   : > { %v1977_v27 = vadd.f32 1e-05, %v1975_v26 }
 0xe42   : > { %2814 = vrsqrt.f32 %v1977_v27 }
 0xe4f   : > { %v2815_v33 = vpop.eup %2814 }
 0xe50   : > { %v1981_v34 = vmul.f32 %v2815_v33, %v1965_v15 }
 0xe52   : > { %v1987_v36 = vmul.f32 %v1985_v31, %v1981_v34 }
 0xe54   : > { %v1993_v39 = vadd.f32 %v1991_v38, %v1987_v36 }
 0xe56   : > { %v1994_v40 = vpack.c.bf16 %v1993_v39, %v1992_v37 }
 0xe58   : > { %2677 = vmatmul.mubr.msk.bf16.vlgmr.msra.gmra.mxu1 %vm527_vm2, %v1994_v40 }
 0xf18   : > { %v2052_v47 = vpop.f32.mrf.mxu1 }
 0xf19   : > { %v2053_v16 = vadd.f32 %v2052_v47, %v2002_v46 }
 0xf1a   : > { %v2678_v49 = vpop.f32.mrf.mxu1 }
 0xf1b   : > { %v2059_v53 = vmax.f32 %v2053_v16, 0.0 }
 0xf1c   : > { %v2055_v51 = vpop.f32.mrf.mxu1 }
 0xf1d   : > { %v2056_v29 = vadd.f32 %v2055_v51, %v2002_v46 }
 0xf1e   : > { %v2679_v52 = vpop.f32.mrf.mxu1 }
 0xf1f   : > { %v2060_v48 = vmax.f32 %v2056_v29, 0.0 }
 0xf21   : > { %v2061_v54 = vpack.c.bf16 %v2060_v48, %v2059_v53 }
 0xf23   : > { %2689 = vmatmul.mubr.msk.bf16.vlgmr.msra.gmra.mxu0 %vm2098_vm5, %v2061_v54 }
 0xfe3   : > { %v2136_v55 = vpop.f32.mrf.mxu0 }
 0xfe4   : > { %v2137_v56 = vadd.f32 %v2136_v55, %v2073_v3 }
 0xfe5   : > { %v2690_v57 = vpop.f32.mrf.mxu0 }
 0xfe6   : > { %v2143_v58 = vadd.f32 %v2137_v56, %v1992_v37 }
 0xfe7   : > { %v2139_v59 = vpop.f32.mrf.mxu0 }
 0xfe8   : > { %v2140_v60 = vadd.f32 %v2139_v59, %v2073_v3  ;;  %v2145_v44 = vsel %vm527_vm2, %v2143_v58, 0.0 }
 0xfe9   : > { %2146 = vadd.xlane.f32.xlu0 %v2145_v44  ;;  %v2691_v61 = vpop.f32.mrf.mxu0 }
 0xfea   : > { %v2144_v62 = vadd.f32 %v2140_v60, %v1993_v39 }
 0xfec   : > { %v2148_v63 = vsel %vm527_vm2, %v2144_v62, 0.0 }
 0xfed   : > { %2149 = vadd.xlane.f32.xlu1 %v2148_v63 }
0x1072   : > { %v2147_v0 = vpop.xlane.xlu0 %2146 }
0x1073   : > { %v2151_v7 = vmul.f32 0.03125, %v2147_v0 }
0x1075   : > { %v2153_v1 = vsub.f32 %v2143_v58, %v2151_v7 }
0x1076   : > { %v2150_v4 = vpop.xlane.xlu1 %2149 }
0x1077   : > { %v2152_v8 = vmul.f32 0.03125, %v2150_v4  ;;  %v2155_v20 = vmul.f32 %v2153_v1, %v2153_v1 }
0x1079   : > { %v2154_v9 = vsub.f32 %v2144_v62, %v2152_v8  ;;  %v2157_v10 = vsel %vm527_vm2, %v2155_v20, 0.0 }
0x107a   : > { %2158 = vadd.xlane.f32.xlu1 %v2157_v10 }
0x107b   : > { %v2156_v11 = vmul.f32 %v2154_v9, %v2154_v9 }
0x107d   : > { %v2160_v12 = vsel %vm527_vm2, %v2156_v11, 0.0 }
0x107e   : > { %2161 = vadd.xlane.f32.xlu1 %v2160_v12 }
0x1103   : > { %v2159_v15 = vpop.xlane.xlu1 %2158 }
0x1104   : > { %v2163_v43 = vmul.f32 0.03125, %v2159_v15 }
0x1106   : > { %v2165_v19 = vadd.f32 1e-05, %v2163_v43 }
0x1107   : > { %v2162_v28 = vpop.xlane.xlu1 %2161 }
0x1108   : > { %2816 = vrsqrt.f32 %v2165_v19  ;;  %v2164_v21 = vmul.f32 0.03125, %v2162_v28 }
0x110a   : > { %v2166_v6 = vadd.f32 1e-05, %v2164_v21 }
0x110c   : > { %2818 = vrsqrt.f32 %v2166_v6 }
0x1115   : > { %v2817_v24 = vpop.eup %2816 }
0x1116   : > { %v2169_v26 = vmul.f32 %v2817_v24, %v2153_v1 }
0x1118   : > { %v2175_v27 = vmul.f32 %v2174_v23, %v2169_v26 }
0x1119   : > { %v2819_v30 = vpop.eup %2818 }
0x111a   : > { %v2181_v50 = vadd.f32 %v2180_v25, %v2175_v27  ;;  %v2170_v13 = vmul.f32 %v2819_v30, %v2154_v9 }
0x111c   : > { %2183 = vst.msk [vmem:[#allocation2] sm:$0xff] %vm527_vm2, %v2181_v50  ;;  %v2176_v31 = vmul.f32 %v2174_v23, %v2170_v13  ;;  %2188 = sbr.rel (%p2427_p10) target bundleno = 4386 (0x1122), region = 68 }
0x111e   : > { %v2182_v32 = vadd.f32 %v2180_v25, %v2176_v31 }
0x1120   : > { %2184 = vst.msk [vmem:[#allocation2 + $0x8] sm:$0xff] %vm527_vm2, %v2182_v32 }
0x1121   : > { %2189 = vst.msk [vmem:[#allocation8] sm:$0xff] %vm527_vm2, %v2181_v50  ;;  %2190 = vst.msk [vmem:[#allocation8 + $0x8] sm:$0xff] %vm527_vm2, %v2182_v32 }
0x1122 PF: > { %s3521_s5 = sadd.s32 4294967295, %s2958_s10   ;;  %s2969_s13 = smov [#allocation8]  }
0x1123   : > { %p3467_p3 = scmp.eq.s32.totalorder %s3521_s5, 1  ;;  %s2200_s23 = sshll.u32 %s2969_s13, 4  ;;  %s2201_s23 = int_to_ptr.vmem [resolvable:$true] %s2200_s23 }
0x1124   : > { %s2876_s25 = scalar_lea.vmem %s2201_s23, 256  ;;  %p2883_p8 = scmp.lt.s32.totalorder %s2201_s23, %s2201_s23 }
0x1125   : > { %p2877_p4 = scmp.ne.s32.totalorder %s2201_s23, %s2876_s25  ;;  %p2884_p11 = scmp.lt.s32.totalorder %s2876_s25, %s2876_s25 }
0x1127   : > { %p2878_p5 = pnand %p2877_p4, %p3467_p3  ;;  %p2885_p12 = por %p2884_p11, %p2883_p8 }
0x1129   : > { %p2879_p6 = pneg %p2878_p5 }
0x112b   : > { %p2886_p13 = pnand %p2885_p12, %p2879_p6 }
0x112d   : > { %2889 = shalt.err (!%p2886_p13)
}
0x112e   : > { %s2970_s30 = smov 128   ;;  %s2971_s27 = smov 8  }
0x112f   : > { %2697 = dma.vmem_to_hbm [thread:$0]  (%p3467_p3), %s2201_s23, 256, %s3508_s8, [#allocation5], %s2970_s30, %s2970_s30, %s2971_s27  }
0x1130   : > { %2933 = dma.done.wait (%p3467_p3), [#allocation5], 256  }
0x1131   : > { %2935 = vsyncadd (%p3467_p3), [#allocation5], 4294967040 }
0x1132 PF: > { %s25_s10 = sadd.s32 1, %s2958_s10   ;;  %s3523_s18 = sld [smem:[#allocation13_spill]] }
0x1133   : > { %p22_p0 = scmp.ge.s32.totalorder %s25_s10, 4   ;;  %s3524_s19 = sld [smem:[#allocation12_spill]] }
0x1134   : > { %s3525_s27 = smov %s2942_s28  ;;  %s3526_s28 = smov %s2946_s29 }
0x1135   : > { %s3528_s30 = smov %s2954_s9  ;;  %24 = sbr.rel (!%p22_p0) target bundleno = 10 (0xa), region = 129 }
0x1138   : > { %s3527_s29 = smov %s3523_s18 }
0x1139   : > { %s3529_s9 = smov %s3524_s19 }
0x113a   :  { %2216 = vsyncpa [#allocation4], 1 }
0x113b   :  { %2218 = vsyncpa [#allocation4 + $0x1], 1 }
0x113c   :  { %2219 = vsyncpa [#allocation7], 1 }
0x113d   :  { %2221 = vsyncpa [#allocation7 + $0x1], 1 }
0x113e   :  { %2222 = vsyncpa [#allocation5], 1 }
0x113f   :  { %2224 = vsyncpa [#allocation5 + $0x1], 1 }

</bundles_post_ra>
